<compile_context>
chip_gen: v5e
topology: v5e:2x2
jax: 0.10.0
libtpu: 0.0.40
codegen_flags: <defaults>
</compile_context>

<pallas_src>
import functools
import math

import jax
import jax.numpy as jnp
from jax.experimental import pallas as pl
from jax.experimental.pallas import tpu as pltpu


# ---------------------------------------------------------------------------
# Kernel 1: fused LayerNorm + packed QKV projection
# ---------------------------------------------------------------------------
def _ln_qkv_kernel(x_ref, g_ref, b_ref, w_ref, bias_ref, o_ref, *, eps):
    # x_ref:    (tm, E)    token rows
    # g_ref:    (1, E)     LayerNorm gamma
    # b_ref:    (1, E)     LayerNorm beta
    # w_ref:    (E, 3E)    in_proj weight, already transposed
    # bias_ref: (1, 3E)    in_proj bias
    # o_ref:    (tm, 3E)   packed [q | k | v]
    x = x_ref[...].astype(jnp.float32)
    mean = jnp.mean(x, axis=-1, keepdims=True)
    centered = x - mean
    var = jnp.mean(centered * centered, axis=-1, keepdims=True)
    xn = centered * jax.lax.rsqrt(var + eps)
    xn = xn * g_ref[...].astype(jnp.float32) + b_ref[...].astype(jnp.float32)
    acc = jnp.dot(xn.astype(w_ref.dtype), w_ref[...],
                  preferred_element_type=jnp.float32)
    o_ref[...] = (acc + bias_ref[...].astype(jnp.float32)).astype(o_ref.dtype)


# ---------------------------------------------------------------------------
# Kernel 2: attention + output projection, fused over the head axis
# ---------------------------------------------------------------------------
def _mhsa_kernel(q_ref, k_ref, v_ref, wo_ref, bo_ref, o_ref, acc_ref, *, scale):
    # q_ref/k_ref/v_ref: (1, S, hd)  head slices of the packed QKV tensor
    # wo_ref:            (hd, E)     head-h slice of out_proj weight^T
    # bo_ref:            (1, E)      out_proj bias
    # o_ref:             (1, S, E)   final output block (resident over heads)
    # acc_ref:           (S, E) f32  VMEM accumulator
    h = pl.program_id(1)

    @pl.when(h == 0)
    def _():
        acc_ref[...] = jnp.zeros_like(acc_ref)

    q = q_ref[0].astype(jnp.float32) * scale              # (S, hd)
    k = k_ref[0].astype(jnp.float32)                      # (S, hd)
    # scores = q @ k^T  (contract the head dim; no explicit transpose needed)
    s = jax.lax.dot_general(q, k, (((1,), (1,)), ((), ())),
                            preferred_element_type=jnp.float32)   # (S, S)
    m = jnp.max(s, axis=-1, keepdims=True)
    p = jnp.exp(s - m)
    l = jnp.sum(p, axis=-1, keepdims=True)
    p = p / l                                              # softmax
    head_out = jnp.dot(p.astype(v_ref.dtype), v_ref[0],
                       preferred_element_type=jnp.float32)        # (S, hd)
    acc_ref[...] += jnp.dot(head_out.astype(wo_ref.dtype), wo_ref[...],
                            preferred_element_type=jnp.float32)   # (S, E)

    @pl.when(h == pl.num_programs(1) - 1)
    def _():
        o_ref[0] = (acc_ref[...] + bo_ref[...].astype(jnp.float32)
                    ).astype(o_ref.dtype)


# ---------------------------------------------------------------------------
# Wrapper
# ---------------------------------------------------------------------------
def multihead_self_attention_block(x, ln_gamma, ln_beta,
                                   in_proj_w, in_proj_b,
                                   out_proj_w, out_proj_b,
                                   *, num_heads, eps=1e-5):
    """Forward pass of MultiHeadSelfAttentionBlock.

    Args:
      x:          (B, S, E)   batch_first input (same as the PyTorch module).
      ln_gamma:   (E,)        LayerNorm weight.
      ln_beta:    (E,)        LayerNorm bias.
      in_proj_w:  (3E, E)     nn.MultiheadAttention in_proj_weight ([Wq;Wk;Wv]).
      in_proj_b:  (3E,)       in_proj_bias.
      out_proj_w: (E, E)      out_proj.weight.
      out_proj_b: (E,)        out_proj.bias.
    Returns:
      (B, S, E) attention output.
    """
    B, S, E = x.shape
    H = num_heads
    assert E % H == 0
    hd = E // H
    assert hd % 128 == 0, "head_dim must be a multiple of 128 for lane-dense head blocks"
    scale = 1.0 / math.sqrt(hd)

    # ------------------ LayerNorm + QKV projection ------------------
    M = B * S
    x2d = x.reshape(M, E)
    w_qkv = in_proj_w.T                       # (E, 3E)
    b_qkv = in_proj_b.reshape(1, 3 * E)
    g = ln_gamma.reshape(1, E)
    beta = ln_beta.reshape(1, E)

    # Large row tile (up to 512), multiple of 8; pad M instead of divisor hunt.
    tm = min(M, 512)
    tm = max(8, (tm // 8) * 8)
    Mp = ((M + tm - 1) // tm) * tm
    x2d_p = x2d if Mp == M else jnp.pad(x2d, ((0, Mp - M), (0, 0)))

    qkv = pl.pallas_call(
        functools.partial(_ln_qkv_kernel, eps=eps),
        out_shape=jax.ShapeDtypeStruct((Mp, 3 * E), x.dtype),
        grid_spec=pltpu.PrefetchScalarGridSpec(
            num_scalar_prefetch=0,
            grid=(Mp // tm,),
            in_specs=[
                pl.BlockSpec((tm, E), lambda i: (i, 0)),
                pl.BlockSpec((1, E), lambda i: (0, 0)),
                pl.BlockSpec((1, E), lambda i: (0, 0)),
                pl.BlockSpec((E, 3 * E), lambda i: (0, 0)),   # weight resident
                pl.BlockSpec((1, 3 * E), lambda i: (0, 0)),
            ],
            out_specs=pl.BlockSpec((tm, 3 * E), lambda i: (i, 0)),
        ),
        compiler_params=pltpu.CompilerParams(
            dimension_semantics=("parallel",)),
        cost_estimate=pl.CostEstimate(
            flops=2 * Mp * E * 3 * E,
            transcendentals=Mp,
            bytes_accessed=4 * (Mp * E + E * 3 * E + Mp * 3 * E)),
    )(x2d_p, g, beta, w_qkv, b_qkv)

    if Mp != M:
        qkv = qkv[:M]
    qkv = qkv.reshape(B, S, 3 * E)            # [q | k | v], heads contiguous

    # ------------- attention + output projection (fused) -------------
    wo = out_proj_w.T                         # (E, E)
    bo = out_proj_b.reshape(1, E)

    # Head slicing handled entirely via index_maps on the packed QKV tensor
    # (block index is in units of hd along the last axis).
    q_spec = pl.BlockSpec((1, S, hd), lambda b, h: (b, 0, h))
    k_spec = pl.BlockSpec((1, S, hd), lambda b, h: (b, 0, H + h))
    v_spec = pl.BlockSpec((1, S, hd), lambda b, h: (b, 0, 2 * H + h))

    out = pl.pallas_call(
        functools.partial(_mhsa_kernel, scale=scale),
        out_shape=jax.ShapeDtypeStruct((B, S, E), x.dtype),
        grid_spec=pltpu.PrefetchScalarGridSpec(
            num_scalar_prefetch=0,
            grid=(B, H),                       # head axis last (reduction)
            in_specs=[
                q_spec, k_spec, v_spec,
                pl.BlockSpec((hd, E), lambda b, h: (h, 0)),   # W_out^T head slice
                pl.BlockSpec((1, E), lambda b, h: (0, 0)),
            ],
            out_specs=pl.BlockSpec((1, S, E), lambda b, h: (b, 0, 0)),
            scratch_shapes=[pltpu.VMEM((S, E), jnp.float32)],
        ),
        compiler_params=pltpu.CompilerParams(
            dimension_semantics=("parallel", "arbitrary")),
        cost_estimate=pl.CostEstimate(
            flops=2 * B * H * (2 * S * S * hd + S * hd * E),
            transcendentals=B * H * S * S,
            bytes_accessed=4 * (3 * B * S * E + E * E + B * S * E)),
    )(qkv, qkv, qkv, wo, bo)

    return out


if __name__ == "__main__":
    # Small shapes consistent with the module (head_dim kept at 128 for
    # lane-dense blocks): B=2, S=16, E=256, num_heads=2.
    B, S, E, H = 2, 16, 256, 2
    eps = 1e-5

    key = jax.random.PRNGKey(0)
    kx, k1, k2, k3, k4, k5, k6 = jax.random.split(key, 7)

    x = jax.random.normal(kx, (B, S, E), dtype=jnp.float32)
    ln_gamma = 1.0 + 0.1 * jax.random.normal(k1, (E,), dtype=jnp.float32)
    ln_beta = 0.1 * jax.random.normal(k2, (E,), dtype=jnp.float32)
    in_proj_w = jax.random.normal(k3, (3 * E, E), dtype=jnp.float32) / jnp.sqrt(E)
    in_proj_b = 0.02 * jax.random.normal(k4, (3 * E,), dtype=jnp.float32)
    out_proj_w = jax.random.normal(k5, (E, E), dtype=jnp.float32) / jnp.sqrt(E)
    out_proj_b = 0.02 * jax.random.normal(k6, (E,), dtype=jnp.float32)

    fwd = jax.jit(functools.partial(
        multihead_self_attention_block, num_heads=H, eps=eps))
    out = fwd(x, ln_gamma, ln_beta, in_proj_w, in_proj_b,
              out_proj_w, out_proj_b)
    jax.block_until_ready(out)

    # --------- pure-JAX reference (matches PyTorch module math) ----------
    def reference(x):
        mean = x.mean(-1, keepdims=True)
        var = ((x - mean) ** 2).mean(-1, keepdims=True)
        xn = (x - mean) / jnp.sqrt(var + eps) * ln_gamma + ln_beta
        hd = E // H
        qkv = xn @ in_proj_w.T + in_proj_b
        q, k, v = jnp.split(qkv, 3, axis=-1)

        def split_heads(t):
            return t.reshape(B, S, H, hd).transpose(0, 2, 1, 3)

        q, k, v = split_heads(q), split_heads(k), split_heads(v)
        s = jnp.einsum("bhqd,bhkd->bhqk", q, k) / jnp.sqrt(hd)
        p = jax.nn.softmax(s, axis=-1)
        o = jnp.einsum("bhqk,bhkd->bhqd", p, v)
        o = o.transpose(0, 2, 1, 3).reshape(B, S, E)
        return o @ out_proj_w.T + out_proj_b

    ref = reference(x)
    assert out.shape == (B, S, E)
    max_err = float(jnp.max(jnp.abs(out - ref)))
    assert jnp.allclose(out, ref, atol=2e-4, rtol=2e-4), max_err

    # TODO(synk): attn_dropout is 0 in the spec (and a no-op at inference),
    # so dropout is intentionally not implemented.
    print("KERNEL_OK")
</pallas_src>

<mosaic_0001>
module attributes {stable_mosaic.version = 11 : i64} {
  func.func @_ln_qkv_kernel(%arg0: i32, %arg1: memref<32x256xf32, #tpu.memory_space<vmem>>, %arg2: memref<1x256xf32, #tpu.memory_space<vmem>>, %arg3: memref<1x256xf32, #tpu.memory_space<vmem>>, %arg4: memref<256x768xf32, #tpu.memory_space<vmem>>, %arg5: memref<1x768xf32, #tpu.memory_space<vmem>>, %arg6: memref<32x768xf32, #tpu.memory_space<vmem>>) attributes {dimension_semantics = [#tpu.dimension_semantics<parallel>], iteration_bounds = array<i64: 1>, scalar_prefetch = 0 : i64, scratch_operands = 0 : i64, tpu.core_type = #tpu.core_type<tc>, window_params = [{transform_indices = @transform_0, window_bounds = array<i64: 32, 256>}, {pipeline_mode = #tpu.pipeline_mode<synchronous>, transform_indices = @transform_1, window_bounds = array<i64: 1, 256>}, {pipeline_mode = #tpu.pipeline_mode<synchronous>, transform_indices = @transform_2, window_bounds = array<i64: 1, 256>}, {pipeline_mode = #tpu.pipeline_mode<synchronous>, transform_indices = @transform_3, window_bounds = array<i64: 256, 768>}, {pipeline_mode = #tpu.pipeline_mode<synchronous>, transform_indices = @transform_4, window_bounds = array<i64: 1, 768>}, {transform_indices = @transform_5, window_bounds = array<i64: 32, 768>}]} {
    %c0 = arith.constant 0 : index
    %c0_0 = arith.constant 0 : index
    %0 = vector.load %arg1[%c0, %c0_0] : memref<32x256xf32, #tpu.memory_space<vmem>>, vector<32x256xf32>
    %cst = arith.constant dense<0.000000e+00> : vector<32xf32>
    %1 = vector.multi_reduction <add>, %0, %cst [1] : vector<32x256xf32> to vector<32xf32>
    %2 = vector.shape_cast %1 : vector<32xf32> to vector<32x1xf32>
    %cst_1 = arith.constant 2.560000e+02 : f32
    %3 = vector.broadcast %cst_1 : f32 to vector<32x1xf32>
    %4 = arith.divf %2, %3 : vector<32x1xf32>
    %5 = vector.broadcast %4 : vector<32x1xf32> to vector<32x256xf32>
    %6 = arith.subf %0, %5 : vector<32x256xf32>
    %7 = arith.mulf %6, %6 : vector<32x256xf32>
    %cst_2 = arith.constant dense<0.000000e+00> : vector<32xf32>
    %8 = vector.multi_reduction <add>, %7, %cst_2 [1] : vector<32x256xf32> to vector<32xf32>
    %9 = vector.shape_cast %8 : vector<32xf32> to vector<32x1xf32>
    %cst_3 = arith.constant 2.560000e+02 : f32
    %10 = vector.broadcast %cst_3 : f32 to vector<32x1xf32>
    %11 = arith.divf %9, %10 : vector<32x1xf32>
    %cst_4 = arith.constant 9.99999974E-6 : f32
    %12 = vector.broadcast %cst_4 : f32 to vector<32x1xf32>
    %13 = arith.addf %11, %12 : vector<32x1xf32>
    %14 = math.rsqrt %13 : vector<32x1xf32>
    %15 = vector.broadcast %14 : vector<32x1xf32> to vector<32x256xf32>
    %16 = arith.mulf %6, %15 : vector<32x256xf32>
    %c0_5 = arith.constant 0 : index
    %c0_6 = arith.constant 0 : index
    %17 = vector.load %arg2[%c0_5, %c0_6] : memref<1x256xf32, #tpu.memory_space<vmem>>, vector<1x256xf32>
    %18 = vector.broadcast %17 : vector<1x256xf32> to vector<32x256xf32>
    %19 = arith.mulf %16, %18 : vector<32x256xf32>
    %c0_7 = arith.constant 0 : index
    %c0_8 = arith.constant 0 : index
    %20 = vector.load %arg3[%c0_7, %c0_8] : memref<1x256xf32, #tpu.memory_space<vmem>>, vector<1x256xf32>
    %21 = vector.broadcast %20 : vector<1x256xf32> to vector<32x256xf32>
    %22 = arith.addf %19, %21 : vector<32x256xf32>
    %c0_9 = arith.constant 0 : index
    %c0_10 = arith.constant 0 : index
    %23 = vector.load %arg4[%c0_9, %c0_10] : memref<256x768xf32, #tpu.memory_space<vmem>>, vector<256x768xf32>
    %cst_11 = arith.constant dense<0.000000e+00> : vector<32x768xf32>
    %24 = tpu.matmul %22, %23, %cst_11 {dimension_numbers = #tpu.dot_dimension_numbers<[1], [0], [0], [1], [0, 0, 1, 1], [], []>} : vector<32x256xf32>, vector<256x768xf32>, vector<32x768xf32> -> vector<32x768xf32>
    %c0_12 = arith.constant 0 : index
    %c0_13 = arith.constant 0 : index
    %25 = vector.load %arg5[%c0_12, %c0_13] : memref<1x768xf32, #tpu.memory_space<vmem>>, vector<1x768xf32>
    %26 = vector.broadcast %25 : vector<1x768xf32> to vector<32x768xf32>
    %27 = arith.addf %24, %26 : vector<32x768xf32>
    %c0_14 = arith.constant 0 : index
    %c0_15 = arith.constant 0 : index
    %28 = vector.load %arg6[%c0_14, %c0_15] : memref<32x768xf32, #tpu.memory_space<vmem>>, vector<32x768xf32>
    tpu.vector_store %arg6[%c0_14, %c0_15], %27 {strides = array<i32>} : memref<32x768xf32, #tpu.memory_space<vmem>>, vector<32x768xf32>,
    return
  }
  func.func @transform_0(%arg0: i32) -> (i32, i32) {
    %c0_i32 = arith.constant 0 : i32
    %c0_i32_0 = arith.constant 0 : i32
    return %arg0, %c0_i32 : i32, i32
  }
  func.func @transform_1(%arg0: i32) -> (i32, i32) {
    %c0_i32 = arith.constant 0 : i32
    %c0_i32_0 = arith.constant 0 : i32
    %c0_i32_1 = arith.constant 0 : i32
    return %c0_i32, %c0_i32_0 : i32, i32
  }
  func.func @transform_2(%arg0: i32) -> (i32, i32) {
    %c0_i32 = arith.constant 0 : i32
    %c0_i32_0 = arith.constant 0 : i32
    %c0_i32_1 = arith.constant 0 : i32
    return %c0_i32, %c0_i32_0 : i32, i32
  }
  func.func @transform_3(%arg0: i32) -> (i32, i32) {
    %c0_i32 = arith.constant 0 : i32
    %c0_i32_0 = arith.constant 0 : i32
    %c0_i32_1 = arith.constant 0 : i32
    return %c0_i32, %c0_i32_0 : i32, i32
  }
  func.func @transform_4(%arg0: i32) -> (i32, i32) {
    %c0_i32 = arith.constant 0 : i32
    %c0_i32_0 = arith.constant 0 : i32
    %c0_i32_1 = arith.constant 0 : i32
    return %c0_i32, %c0_i32_0 : i32, i32
  }
  func.func @transform_5(%arg0: i32) -> (i32, i32) {
    %c0_i32 = arith.constant 0 : i32
    %c0_i32_0 = arith.constant 0 : i32
    return %arg0, %c0_i32 : i32, i32
  }
}

module attributes {stable_mosaic.version = 11 : i64} {
  func.func @_mhsa_kernel(%arg0: i32, %arg1: i32, %arg2: memref<1x16x128xf32, #tpu.memory_space<vmem>>, %arg3: memref<1x16x128xf32, #tpu.memory_space<vmem>>, %arg4: memref<1x16x128xf32, #tpu.memory_space<vmem>>, %arg5: memref<128x256xf32, #tpu.memory_space<vmem>>, %arg6: memref<1x256xf32, #tpu.memory_space<vmem>>, %arg7: memref<1x16x256xf32, #tpu.memory_space<vmem>>, %arg8: memref<16x256xf32, #tpu.memory_space<vmem>>) attributes {dimension_semantics = [#tpu.dimension_semantics<parallel>, #tpu.dimension_semantics<arbitrary>], iteration_bounds = array<i64: 2, 2>, scalar_prefetch = 0 : i64, scratch_operands = 1 : i64, tpu.core_type = #tpu.core_type<tc>, window_params = [{transform_indices = @transform_0, window_bounds = array<i64: 1, 16, 128>}, {transform_indices = @transform_1, window_bounds = array<i64: 1, 16, 128>}, {transform_indices = @transform_2, window_bounds = array<i64: 1, 16, 128>}, {transform_indices = @transform_3, window_bounds = array<i64: 128, 256>}, {pipeline_mode = #tpu.pipeline_mode<synchronous>, transform_indices = @transform_4, window_bounds = array<i64: 1, 256>}, {transform_indices = @transform_5, window_bounds = array<i64: 1, 16, 256>}]} {
    %c0_i32 = arith.constant 0 : i32
    %0 = arith.cmpi eq, %arg1, %c0_i32 : i32
    %1 = arith.extui %0 : i1 to i32
    %c0_i32_0 = arith.constant 0 : i32
    %2 = arith.cmpi ne, %1, %c0_i32_0 : i32
    scf.if %2 {
      %cst_21 = arith.constant 0.000000e+00 : f32
      %30 = vector.broadcast %cst_21 : f32 to vector<16x256xf32>
      %c0_22 = arith.constant 0 : index
      %c0_23 = arith.constant 0 : index
      %31 = vector.load %arg8[%c0_22, %c0_23] : memref<16x256xf32, #tpu.memory_space<vmem>>, vector<16x256xf32>
      tpu.vector_store %arg8[%c0_22, %c0_23], %30 {strides = array<i32>} : memref<16x256xf32, #tpu.memory_space<vmem>>, vector<16x256xf32>,
    } else {
    }
    %c0 = arith.constant 0 : index
    %c0_1 = arith.constant 0 : index
    %c0_2 = arith.constant 0 : index
    %3 = vector.load %arg2[%c0, %c0_1, %c0_2] : memref<1x16x128xf32, #tpu.memory_space<vmem>>, vector<1x16x128xf32>
    %4 = vector.shape_cast %3 : vector<1x16x128xf32> to vector<16x128xf32>
    %cst = arith.constant 0.0883883461 : f32
    %5 = vector.broadcast %cst : f32 to vector<16x128xf32>
    %6 = arith.mulf %4, %5 : vector<16x128xf32>
    %c0_3 = arith.constant 0 : index
    %c0_4 = arith.constant 0 : index
    %c0_5 = arith.constant 0 : index
    %7 = vector.load %arg3[%c0_3, %c0_4, %c0_5] : memref<1x16x128xf32, #tpu.memory_space<vmem>>, vector<1x16x128xf32>
    %8 = vector.shape_cast %7 : vector<1x16x128xf32> to vector<16x128xf32>
    %cst_6 = arith.constant dense<0.000000e+00> : vector<16x16xf32>
    %9 = tpu.matmul %6, %8, %cst_6 {dimension_numbers = #tpu.dot_dimension_numbers<[1], [1], [0], [0], [0, 0, 1, 0], [], []>} : vector<16x128xf32>, vector<16x128xf32>, vector<16x16xf32> -> vector<16x16xf32>
    %cst_7 = arith.constant dense<0xFF800000> : vector<16xf32>
    %10 = vector.multi_reduction <maximumf>, %9, %cst_7 [1] : vector<16x16xf32> to vector<16xf32>
    %11 = vector.shape_cast %10 : vector<16xf32> to vector<16x1xf32>
    %12 = vector.broadcast %11 : vector<16x1xf32> to vector<16x16xf32>
    %13 = arith.subf %9, %12 : vector<16x16xf32>
    %14 = math.exp %13 : vector<16x16xf32>
    %cst_8 = arith.constant dense<0.000000e+00> : vector<16xf32>
    %15 = vector.multi_reduction <add>, %14, %cst_8 [1] : vector<16x16xf32> to vector<16xf32>
    %16 = vector.shape_cast %15 : vector<16xf32> to vector<16x1xf32>
    %17 = vector.broadcast %16 : vector<16x1xf32> to vector<16x16xf32>
    %18 = arith.divf %14, %17 : vector<16x16xf32>
    %c0_9 = arith.constant 0 : index
    %c0_10 = arith.constant 0 : index
    %c0_11 = arith.constant 0 : index
    %19 = vector.load %arg4[%c0_9, %c0_10, %c0_11] : memref<1x16x128xf32, #tpu.memory_space<vmem>>, vector<1x16x128xf32>
    %20 = vector.shape_cast %19 : vector<1x16x128xf32> to vector<16x128xf32>
    %cst_12 = arith.constant dense<0.000000e+00> : vector<16x128xf32>
    %21 = tpu.matmul %18, %20, %cst_12 {dimension_numbers = #tpu.dot_dimension_numbers<[1], [0], [0], [1], [0, 0, 1, 1], [], []>} : vector<16x16xf32>, vector<16x128xf32>, vector<16x128xf32> -> vector<16x128xf32>
    %c0_13 = arith.constant 0 : index
    %c0_14 = arith.constant 0 : index
    %22 = vector.load %arg8[%c0_13, %c0_14] : memref<16x256xf32, #tpu.memory_space<vmem>>, vector<16x256xf32>
    %c0_15 = arith.constant 0 : index
    %c0_16 = arith.constant 0 : index
    %23 = vector.load %arg5[%c0_15, %c0_16] : memref<128x256xf32, #tpu.memory_space<vmem>>, vector<128x256xf32>
    %cst_17 = arith.constant dense<0.000000e+00> : vector<16x256xf32>
    %24 = tpu.matmul %21, %23, %cst_17 {dimension_numbers = #tpu.dot_dimension_numbers<[1], [0], [0], [1], [0, 0, 1, 1], [], []>} : vector<16x128xf32>, vector<128x256xf32>, vector<16x256xf32> -> vector<16x256xf32>
    %25 = arith.addf %22, %24 : vector<16x256xf32>
    %c0_18 = arith.constant 0 : index
    %c0_19 = arith.constant 0 : index
    %26 = vector.load %arg8[%c0_18, %c0_19] : memref<16x256xf32, #tpu.memory_space<vmem>>, vector<16x256xf32>
    tpu.vector_store %arg8[%c0_18, %c0_19], %25 {strides = array<i32>} : memref<16x256xf32, #tpu.memory_space<vmem>>, vector<16x256xf32>,
    %c1_i32 = arith.constant 1 : i32
    %27 = arith.cmpi eq, %arg1, %c1_i32 : i32
    %28 = arith.extui %27 : i1 to i32
    %c0_i32_20 = arith.constant 0 : i32
    %29 = arith.cmpi ne, %28, %c0_i32_20 : i32
    scf.if %29 {
      %c0_21 = arith.constant 0 : index
      %c0_22 = arith.constant 0 : index
      %30 = vector.load %arg8[%c0_21, %c0_22] : memref<16x256xf32, #tpu.memory_space<vmem>>, vector<16x256xf32>
      %c0_23 = arith.constant 0 : index
      %c0_24 = arith.constant 0 : index
      %31 = vector.load %arg6[%c0_23, %c0_24] : memref<1x256xf32, #tpu.memory_space<vmem>>, vector<1x256xf32>
      %32 = vector.broadcast %31 : vector<1x256xf32> to vector<16x256xf32>
      %33 = arith.addf %30, %32 : vector<16x256xf32>
      %c0_25 = arith.constant 0 : index
      %c0_26 = arith.constant 0 : index
      %c0_27 = arith.constant 0 : index
      %34 = vector.load %arg7[%c0_25, %c0_26, %c0_27] : memref<1x16x256xf32, #tpu.memory_space<vmem>>, vector<1x16x256xf32>
      %35 = vector.shape_cast %34 : vector<1x16x256xf32> to vector<16x256xf32>
      %36 = vector.shape_cast %33 : vector<16x256xf32> to vector<1x16x256xf32>
      tpu.vector_store %arg7[%c0_25, %c0_26, %c0_27], %36 {strides = array<i32>} : memref<1x16x256xf32, #tpu.memory_space<vmem>>, vector<1x16x256xf32>,
    } else {
    }
    return
  }
  func.func @transform_0(%arg0: i32, %arg1: i32) -> (i32, i32, i32) {
    %c0_i32 = arith.constant 0 : i32
    %c0_i32_0 = arith.constant 0 : i32
    return %arg0, %c0_i32, %arg1 : i32, i32, i32
  }
  func.func @transform_1(%arg0: i32, %arg1: i32) -> (i32, i32, i32) {
    %c2_i32 = arith.constant 2 : i32
    %0 = arith.addi %c2_i32, %arg1 : i32
    %c0_i32 = arith.constant 0 : i32
    %c0_i32_0 = arith.constant 0 : i32
    return %arg0, %c0_i32, %0 : i32, i32, i32
  }
  func.func @transform_2(%arg0: i32, %arg1: i32) -> (i32, i32, i32) {
    %c4_i32 = arith.constant 4 : i32
    %0 = arith.addi %c4_i32, %arg1 : i32
    %c0_i32 = arith.constant 0 : i32
    %c0_i32_0 = arith.constant 0 : i32
    return %arg0, %c0_i32, %0 : i32, i32, i32
  }
  func.func @transform_3(%arg0: i32, %arg1: i32) -> (i32, i32) {
    %c0_i32 = arith.constant 0 : i32
    %c0_i32_0 = arith.constant 0 : i32
    return %arg1, %c0_i32 : i32, i32
  }
  func.func @transform_4(%arg0: i32, %arg1: i32) -> (i32, i32) {
    %c0_i32 = arith.constant 0 : i32
    %c0_i32_0 = arith.constant 0 : i32
    %c0_i32_1 = arith.constant 0 : i32
    return %c0_i32, %c0_i32_0 : i32, i32
  }
  func.func @transform_5(%arg0: i32, %arg1: i32) -> (i32, i32, i32) {
    %c0_i32 = arith.constant 0 : i32
    %c0_i32_0 = arith.constant 0 : i32
    %c0_i32_1 = arith.constant 0 : i32
    return %arg0, %c0_i32, %c0_i32_0 : i32, i32, i32
  }
}

</mosaic_0001>

<bundles_post_ra>
// kernel: multihead_self_attention_block.3
= control target key start
LH: loop header
LB: loop body
LE: loop exit
PB: predicated region body
PF: predicated region fallthrough
CT: control target
= control target key end

     0   :  { %s1500_s0 = inlined_call_operand.vmem [shape: f32[2,16,768], index: 0, kind: input, shape index: {}, may-alias: {0,1,2}]   ;;  %s1501_s1 = inlined_call_operand.vmem [shape: f32[2,16,768], index: 1, kind: input, shape index: {}, may-alias: {0,1,2}]   ;;  %s1502_s2 = inlined_call_operand.vmem [shape: f32[2,16,768], index: 2, kind: input, shape index: {}, may-alias: {0,1,2}]   ;;  %s1503_s3 = inlined_call_operand.vmem [shape: f32[256,256], index: 3, kind: input, shape index: {}]   ;;  %s1504_s4 = inlined_call_operand.vmem [shape: f32[1,256], index: 4, kind: input, shape index: {}]   ;;  %s1505_s5 = inlined_call_operand.hbm [shape: f32[2,16,256], index: 5, kind: output, shape index: {}]  }
   0x1   :  { %1511 = sst [smem:[#allocation17_spill]] %s1500_s0 }
   0x2   :  { %1512 = sst [smem:[#allocation18_spill]] %s1503_s3 }
   0x3   :  { %1513 = sst [smem:[#allocation19_spill]] %s1504_s4 }
   0x4   :  { %1514 = sst [smem:[#allocation20_spill]] %s1505_s5 }
   0x5   :  { %10 = vsyncpa [#allocation7], 0 }
   0x6   :  { %12 = vsyncpa [#allocation7 + $0x1], 0  ;;  %s1174_s18 = smov 0   ;;  %s1176_s19 = smov 0  }
   0x7   :  { %s1178_s20 = smov 0   ;;  %s1180_s21 = smov 0  }
   0x8   :  { %s1182_s22 = smov 0   ;;  %s1184_s23 = smov 0  }
   0x9   :  { %s1186_s24 = smov 0   ;;  %s1188_s25 = smov 0  }
   0xa   :  { %s1190_s26 = smov 0   ;;  %s1192_s27 = smov 0  }
   0xb   :  { %s1194_s28 = smov 0   ;;  %s1196_s29 = smov 0  }
   0xc   :  { %s1198_s30 = smov 0   ;;  %s1200_s6 = smov 0  }
   0xd LB: > { %1515 = sst [smem:[#allocation9_spill]] %s1119_s26  ;;  %s27_s9 = sadd.s32 1, %s1131_s29  ;;  %s1139_s6 = sphi %s1200_s6, %s18_s6   ;;  %s1135_s30 = sphi %s1198_s30, %s1554_s30   ;;  %s1131_s29 = sphi %s1196_s29, %s1553_s29   ;;  %s1127_s28 = sphi %s1194_s28, %s1552_s28   ;;  %s1123_s27 = sphi %s1192_s27, %s1551_s27   ;;  %s1119_s26 = sphi %s1190_s26, %s1541_s26   ;;  %s1115_s25 = sphi %s1188_s25, %s1540_s25   ;;  %s1111_s24 = sphi %s1186_s24, %s1550_s24   ;;  %s1107_s23 = sphi %s1184_s23, %s1549_s23   ;;  %s1103_s22 = sphi %s1182_s22, %s1548_s22   ;;  %s1099_s21 = sphi %s1180_s21, %s1547_s21   ;;  %s1095_s20 = sphi %s1178_s20, %s1546_s20   ;;  %s1091_s19 = sphi %s1176_s19, %s1545_s19   ;;  %s1087_s18 = sphi %s1174_s18, %s1544_s18  }
   0xe   : > { %1516 = sst [smem:[#allocation10_spill]] %s1123_s27  ;;  %s30_s10 = sadd.s32 1, %s1135_s30 }
   0xf   : > { %1517 = sst [smem:[#allocation11_spill]] %s1127_s28  ;;  %p28_p0 = scmp.ge.s32.totalorder %s27_s9, 2 }
  0x10   : > { %s39_s11 = sadd.s32 1, %s1119_s26  ;;  %p46_p1 = scmp.ne.s32.totalorder %s1119_s26, %s1115_s25 }
  0x11   : > { %p47_p2 = scmp.eq.s32.totalorder %s1139_s6, 0  ;;  %s1556_s9 = smov (%p28_p0, %s27_s9), 0 }
  0x12   : > { %1518 = sst [smem:[#allocation12_spill]] %s1556_s9  ;;  %s1558_s10 = smov (!%p28_p0, %s30_s10), %s1135_s30 }
  0x13   : > { %s35_s12 = ssub.s32 %s1131_s29, %s1556_s9  ;;  %p1259_p3 = por %p47_p2, %p46_p1 }
  0x14   : > { %p32_p4 = scmp.ge.s32.totalorder %s1558_s10, 2  ;;  %s62_s14 = sadd.s32 2, %s1131_s29 }
  0x15   : > { %s63_s15 = sadd.s32 2, %s1556_s9  ;;  %s69_s16 = sadd.s32 1, %s1111_s24 }
  0x16   : > { %s1560_s10 = smov (%p32_p4, %s1558_s10), 0  ;;  %s65_s17 = ssub.s32 %s62_s14, %s63_s15 }
  0x17   : > { %1520 = sst [smem:[#allocation13_spill]] %s1560_s10  ;;  %p76_p5 = scmp.ne.s32.totalorder %s1111_s24, %s1107_s23 }
  0x18   : > { %s34_s8 = ssub.s32 %s1135_s30, %s1560_s10  ;;  %s92_s7 = sadd.s32 4, %s1131_s29 }
  0x19   : > { %s36_s5 = sor.u32 %s35_s12, %s34_s8  ;;  %s66_s28 = sor.u32 %s65_s17, %s34_s8 }
  0x1a   : > { %p37_p6 = scmp.eq.s32.totalorder %s36_s5, 0  ;;  %p67_p7 = scmp.eq.s32.totalorder %s66_s28, 0 }
  0x1b   : > { %p1275_p8 = por %p76_p5, %p47_p2  ;;  %s93_s14 = sadd.s32 4, %s1556_s9 }
  0x1c   : > { %s1281_s15 = scalar_select %p37_p6, %s1119_s26, %s39_s11  }
  0x1d   : > { %s1284_s12 = scalar_select %p67_p7, %s1111_s24, %s69_s16  }
  0x1e   : > { %1522 = sst [smem:[#allocation14_spill]] %s1281_s15  ;;  %s95_s17 = ssub.s32 %s92_s7, %s93_s14 }
  0x1f   : > { %1523 = sst [smem:[#allocation15_spill]] %s1284_s12  ;;  %s99_s10 = sadd.s32 1, %s1103_s22 }
  0x20   : > { %s96_s5 = sor.u32 %s95_s17, %s34_s8  ;;  %p106_p9 = scmp.ne.s32.totalorder %s1103_s22, %s1099_s21 }
  0x21   : > { %p97_p10 = scmp.eq.s32.totalorder %s96_s5, 0  ;;  %p170_p11 = scmp.eq.s32.totalorder %s34_s8, 0 }
  0x22   : > { %p1291_p12 = por %p106_p9, %p47_p2  ;;  %s172_s3 = sadd.s32 1, %s1095_s20 }
  0x23   : > { %s1297_s27 = scalar_select %p97_p10, %s1103_s22, %s99_s10  }
  0x24   : > { %s1300_s9 = scalar_select %p170_p11, %s1095_s20, %s172_s3  }
  0x25   : > { %1525 = sst [smem:[#allocation16_spill]] %s1297_s27  ;;  %p182_p13 = scmp.ne.s32.totalorder %s1095_s20, %s1091_s19 }
  0x26   : > { %s1526_s11 = sadd.s32 4294967295, %s1139_s6   ;;  %p188_p1 = scmp.ne.s32.totalorder %s1091_s19, %s1087_s18 }
  0x27   : > { %p183_p0 = scmp.eq.s32.totalorder %s1526_s11, 3  ;;  %s1527_s7 = sadd.s32 4294967294, %s1139_s6  }
  0x28   : > { %p189_p4 = scmp.eq.s32.totalorder %s1527_s7, 3  ;;  %p820_p2 = scmp.ge.s32.totalorder %s1139_s6, 4 }
  0x29   : > { %p1310_p5 = por %p183_p0, %p182_p13 }
  0x2a   : > { %p1314_p6 = por %p189_p4, %p188_p1  ;;  %208 = sbr.rel (%p820_p2) target bundleno = 77 (0x4d), region = 20 }
  0x2f   : > { %211 = sbr.rel (!%p1259_p3) target bundleno = 59 (0x3b), region = 24  ;;  %s213_s3 = sand.u32 (%p1259_p3), 1, %s1119_s26  }
  0x30   : > { %s866_s10 = smul.u32 (%p1259_p3), 12, %s1135_s30  ;;  %s821_s14 = sshll.u32 (%p1259_p3), %s213_s3, 4 }
  0x31   : > { %s1530_s0 = sld [smem:[#allocation17_spill]] (%p1259_p3)  ;;  %s215_s12 = scalar_lea.vmem (%p1259_p3), [#allocation3], %s821_s14 }
  0x32   : > { %s217_s17 = sadd.s32 (%p1259_p3), %s1131_s29, %s866_s10 }
  0x33   : > { %s822_s5 = sshll.u32 (%p1259_p3), %s217_s17, 3 }
  0x37   : > { %s219_s15 = scalar_lea.vmem %s1530_s0, %s822_s5 }
  0x38   : > { %v250_v0 = vld [vmem:[%s219_s15] sm:$0xff]  ;;  %v252_v1 = vld [vmem:[%s219_s15 + $0x30] sm:$0xff] }
  0x39   : > { %251 = vst [vmem:[%s215_s12] sm:$0xff] %v250_v0 }
  0x3a   : > { %253 = vst [vmem:[%s215_s12 + $0x8] sm:$0xff] %v252_v1 }
  0x3b PF: > { %259 = sbr.rel (!%p1275_p8) target bundleno = 68 (0x44), region = 62  ;;  %s261_s13 = sand.u32 (%p1275_p8), 1, %s1111_s24  }
  0x3c   : > { %s714_s3 = smul.u32 (%p1275_p8), 12, %s1135_s30  ;;  %s823_s10 = sshll.u32 (%p1275_p8), %s261_s13, 4 }
  0x3d   : > { %s263_s15 = scalar_lea.vmem (%p1275_p8), [#allocation4], %s823_s10 }
  0x3e   : > { %s715_s17 = sadd.s32 (%p1275_p8), %s1131_s29, %s714_s3 }
  0x3f   : > { %s824_s26 = sshll.u32 (%p1275_p8), %s715_s17, 3 }
  0x40   : > { %s717_s5 = scalar_lea.vmem %s1501_s1, %s824_s26 }
  0x41   : > { %v825_v2 = vld [vmem:[%s717_s5 + $0x10] sm:$0xff]  ;;  %v826_v3 = vld [vmem:[%s717_s5 + $0x40] sm:$0xff] }
  0x42   : > { %300 = vst [vmem:[%s263_s15] sm:$0xff] %v825_v2 }
  0x43   : > { %302 = vst [vmem:[%s263_s15 + $0x8] sm:$0xff] %v826_v3 }
  0x44 PF: > { %308 = sbr.rel (!%p1291_p12) target bundleno = 77 (0x4d), region = 100  ;;  %s310_s4 = sand.u32 (%p1291_p12), 1, %s1103_s22  }
  0x45   : > { %s721_s12 = smul.u32 (%p1291_p12), 12, %s1135_s30  ;;  %s827_s14 = sshll.u32 (%p1291_p12), %s310_s4, 4 }
  0x46   : > { %s312_s10 = scalar_lea.vmem (%p1291_p12), [#allocation5], %s827_s14 }
  0x47   : > { %s722_s7 = sadd.s32 (%p1291_p12), %s1131_s29, %s721_s12 }
  0x48   : > { %s828_s13 = sshll.u32 (%p1291_p12), %s722_s7, 3 }
  0x49   : > { %s724_s26 = scalar_lea.vmem %s1502_s2, %s828_s13 }
  0x4a   : > { %v829_v4 = vld [vmem:[%s724_s26 + $0x20] sm:$0xff]  ;;  %v830_v5 = vld [vmem:[%s724_s26 + $0x50] sm:$0xff] }
  0x4b   : > { %349 = vst [vmem:[%s312_s10] sm:$0xff] %v829_v4 }
  0x4c   : > { %351 = vst [vmem:[%s312_s10 + $0x8] sm:$0xff] %v830_v5 }
  0x4d PF: > { %p831_p3 = scmp.ge.s32.totalorder %s1139_s6, 1  ;;  %p366_p7 = scmp.lt.s32.totalorder %s1139_s6, 5 }
  0x4f   : > { %p367_p8 = pnand %p831_p3, %p366_p7 }
  0x50   : > { %s1531_s28 = sld [smem:[#allocation10_spill]] (!%p367_p8)  ;;  %s373_s17 = sand.u32 (!%p367_p8), 1, %s1115_s25  }
  0x51   : > { %370 = sbr.rel (%p367_p8) target bundleno = 800 (0x320), region = 142  ;;  %s380_s11 = sand.u32 (!%p367_p8), 1, %s1107_s23  }
  0x52   : > { %s1347_s5 = sshll.u32 (!%p367_p8), %s373_s17, 4  ;;  %s833_s15 = sshll.u32 (!%p367_p8), %s380_s11, 4 }
  0x53   : > { %s387_s4 = sand.u32 (!%p367_p8), 1, %s1099_s21   ;;  %s425_s12 = sand.u32 (!%p367_p8), 1, %s1091_s19  }
  0x54   : > { %s1351_s14 = sshll.u32 (!%p367_p8), %s387_s4, 4  ;;  %s835_s7 = sshll.u32 (!%p367_p8), %s425_s12, 5 }
  0x55   : > { %s1532_s10 = sld [smem:[#allocation18_spill]] (!%p367_p8)  ;;  %s375_s23 = scalar_lea.vmem (!%p367_p8), [#allocation3], %s1347_s5 }
  0x56   : > { %s836_s13 = sshll.u32 %s1531_s28, 4  ;;  %s382_s17 = scalar_lea.vmem [#allocation4], %s833_s15 }
  0x57   : > { %p431_p9 = scmp.lt.s32.totalorder %s836_s13, 31  ;;  %s389_s0 = scalar_lea.vmem [#allocation5], %s1351_s14 }
  0x58   : > { %s1363_s11 = scalar_lea.vmem [#allocation6], %s835_s7  ;;  %p839_p10 = scmp.ne.s32.totalorder %s1531_s28, 0 }
  0x59   : > { %s1562_s13 = smov (!%p431_p9, %s836_s13), 31 }
  0x5a   : > { %s848_s3 = sshll.u32 %s1562_s13, 4  ;;  %440 = sbr.rel (%p839_p10) target bundleno = 100 (0x64), region = 158 }
  0x5b   : > { %s1359_s25 = scalar_lea.vmem %s1532_s10, %s848_s3 }
  0x5f   : > { %v1141_v6 = vmov 0.0  }
  0x60   : > { %441 = vst [vmem:[#allocation2 + $0x10] sm:$0xff] %v1141_v6 }
  0x61   : > { %442 = vst [vmem:[#allocation2] sm:$0xff] %v1141_v6 }
  0x62   : > { %443 = vst [vmem:[#allocation2 + $0x18] sm:$0xff] %v1141_v6 }
  0x63   : > { %444 = vst [vmem:[#allocation2 + $0x8] sm:$0xff] %v1141_v6 }
  0x64 PF: > { %v450_v7 = vld [vmem:[%s382_s17 + $0x8] sm:$0xff]  ;;  %v445_v8 = vld [vmem:[%s375_s23] sm:$0xff]  ;;  %vm474_vm0 = vcmask 130048  }
  0x65   : > { %465 = vmatpush.xpose.msra.mxu0 %v450_v7  ;;  %v449_v9 = vld [vmem:[%s382_s17] sm:$0xff]  ;;  %v447_v10 = vmul.f32 0.088388346, %v445_v8  ;;  %v446_v11 = vld [vmem:[%s375_s23 + $0x8] sm:$0xff] }
  0x66   : > { %v448_v12 = vmul.f32 0.088388346, %v446_v11  ;;  %v524_v27 = vld [vmem:[%s389_s0 + $0x8] sm:$0xff]  ;;  %v523_v28 = vld [vmem:[%s389_s0] sm:$0xff]  ;;  %s1533_s0 = sld [smem:[#allocation10_spill]] }
  0x67   : > { %545 = vmatpush.msra.mxu1 %v524_v27  ;;  %v588_v29 = vld [vmem:[%s1359_s25 + $0xf0] sm:$0xff]  ;;  %v589_v30 = vld [vmem:[%s1359_s25 + $0xf8] sm:$0xff]  ;;  %v586_v31 = vld [vmem:[%s1359_s25 + $0xe0] sm:$0xff] }
  0x68   : > { %613 = vmatpush.msra.mxu3 %v589_v30  ;;  %v587_v32 = vld [vmem:[%s1359_s25 + $0xe8] sm:$0xff]  ;;  %v584_v33 = vld [vmem:[%s1359_s25 + $0xd0] sm:$0xff]  ;;  %v585_v34 = vld [vmem:[%s1359_s25 + $0xd8] sm:$0xff]  ;;  %850 = vmatpush.msra.mxu2 %v588_v29 }
  0x69   : > { %466 = vmatpush.xpose.msra.mxu0 %v449_v9  ;;  %546 = vmatpush.msra.mxu1 %v523_v28  ;;  %v582_v36 = vld [vmem:[%s1359_s25 + $0xc0] sm:$0xff]  ;;  %v583_v37 = vld [vmem:[%s1359_s25 + $0xc8] sm:$0xff]  ;;  %v580_v38 = vld [vmem:[%s1359_s25 + $0xb0] sm:$0xff] }
  0x6a   : > { %614 = vmatpush.msra.mxu3 %v587_v32  ;;  %851 = vmatpush.msra.mxu2 %v586_v31  ;;  %v581_v39 = vld [vmem:[%s1359_s25 + $0xb8] sm:$0xff]  ;;  %v578_v40 = vld [vmem:[%s1359_s25 + $0xa0] sm:$0xff]  ;;  %v579_v41 = vld [vmem:[%s1359_s25 + $0xa8] sm:$0xff] }
  0x6b   : > { %590 = vmatpush.msrb.mxu1 %v588_v29  ;;  %v576_v42 = vld [vmem:[%s1359_s25 + $0x90] sm:$0xff]  ;;  %v577_v43 = vld [vmem:[%s1359_s25 + $0x98] sm:$0xff]  ;;  %v574_v47 = vld [vmem:[%s1359_s25 + $0x80] sm:$0xff] }
  0x6c   : > { %467 = vmatmul.f32.vlgmr.msra.gmra.mxu0 %v447_v10  ;;  %615 = vmatpush.msra.mxu3 %v585_v34  ;;  %v575_v48 = vld [vmem:[%s1359_s25 + $0x88] sm:$0xff]  ;;  %v572_v50 = vld [vmem:[%s1359_s25 + $0x70] sm:$0xff]  ;;  %v573_v51 = vld [vmem:[%s1359_s25 + $0x78] sm:$0xff]  ;;  %p842_p11 = scmp.ne.s32.totalorder %s1533_s0, 1 }
  0x6d   : > { %591 = vmatpush.msrb.mxu1 %v586_v31  ;;  %852 = vmatpush.msra.mxu2 %v584_v33  ;;  %v570_v55 = vld [vmem:[%s1359_s25 + $0x60] sm:$0xff]  ;;  %v571_v56 = vld [vmem:[%s1359_s25 + $0x68] sm:$0xff]  ;;  %v568_v58 = vld [vmem:[%s1359_s25 + $0x50] sm:$0xff]  ;;  %s1534_s5 = sld [smem:[#allocation19_spill]] (!%p842_p11) }
  0x6e   : > { %616 = vmatpush.msra.mxu3 %v583_v37  ;;  %v569_v59 = vld [vmem:[%s1359_s25 + $0x58] sm:$0xff]  ;;  %v566_v0 = vld [vmem:[%s1359_s25 + $0x40] sm:$0xff]  ;;  %v567_v1 = vld [vmem:[%s1359_s25 + $0x48] sm:$0xff] }
  0x6f   : > { %592 = vmatpush.msrb.mxu1 %v584_v33  ;;  %853 = vmatpush.msra.mxu2 %v582_v36  ;;  %v564_v5 = vld [vmem:[%s1359_s25 + $0x30] sm:$0xff]  ;;  %v565_v6 = vld [vmem:[%s1359_s25 + $0x38] sm:$0xff]  ;;  %v562_v10 = vld [vmem:[%s1359_s25 + $0x20] sm:$0xff] }
  0x70   : > { %617 = vmatpush.msra.mxu3 %v581_v39  ;;  %v563_v11 = vld [vmem:[%s1359_s25 + $0x28] sm:$0xff]  ;;  %v555_v27 = vld [vmem:[#allocation2] sm:$0xff]  ;;  %v556_v29 = vld [vmem:[#allocation2 + $0x18] sm:$0xff] }
  0x71   : > { %593 = vmatpush.msrb.mxu1 %v582_v36  ;;  %854 = vmatpush.msra.mxu2 %v580_v38  ;;  %v557_v30 = vld [vmem:[#allocation2 + $0x8] sm:$0xff] }
  0x72   : > { %618 = vmatpush.msra.mxu3 %v579_v41 }
  0x73   : > { %594 = vmatpush.msrb.mxu1 %v580_v38  ;;  %855 = vmatpush.msra.mxu2 %v578_v40 }
  0x74   : > { %470 = vmatmul.f32.gmra.mxu0 %v448_v12  ;;  %619 = vmatpush.msra.mxu3 %v577_v43 }
  0x75   : > { %595 = vmatpush.msrb.mxu1 %v578_v40  ;;  %856 = vmatpush.msra.mxu2 %v576_v42 }
  0x76   : > { %620 = vmatpush.msra.mxu3 %v575_v48 }
  0x77   : > { %596 = vmatpush.msrb.mxu1 %v576_v42  ;;  %857 = vmatpush.msra.mxu2 %v574_v47 }
  0x78   : > { %621 = vmatpush.msra.mxu3 %v573_v51 }
  0x79   : > { %597 = vmatpush.msrb.mxu1 %v574_v47  ;;  %858 = vmatpush.msra.mxu2 %v572_v50 }
  0x7a   : > { %622 = vmatpush.msra.mxu3 %v571_v56 }
  0x7b   : > { %598 = vmatpush.msrb.mxu1 %v572_v50  ;;  %859 = vmatpush.msra.mxu2 %v570_v55 }
  0x7c   : > { %623 = vmatpush.msra.mxu3 %v569_v59 }
  0x7d   : > { %599 = vmatpush.msrb.mxu1 %v570_v55  ;;  %860 = vmatpush.msra.mxu2 %v568_v58 }
  0x7e   : > { %624 = vmatpush.msra.mxu3 %v567_v1 }
  0x7f   : > { %600 = vmatpush.msrb.mxu1 %v568_v58  ;;  %861 = vmatpush.msra.mxu2 %v566_v0 }
  0x80   : > { %625 = vmatpush.msra.mxu3 %v565_v6 }
  0x81   : > { %601 = vmatpush.msrb.mxu1 %v566_v0  ;;  %862 = vmatpush.msra.mxu2 %v564_v5 }
  0x82   : > { %626 = vmatpush.msra.mxu3 %v563_v11 }
  0x83   : > { %602 = vmatpush.msrb.mxu1 %v564_v5  ;;  %863 = vmatpush.msra.mxu2 %v562_v10 }
  0x85   : > { %603 = vmatpush.msrb.mxu1 %v562_v10 }
  0xe9   : > { %v468_v13 = vpop.f32.mrf.mxu0 }
  0xea   : > { %v475_v14 = vsel %vm474_vm0, %v468_v13, -inf }
  0xeb   : > { %476 = vmax.xlane.f32.xlu0 %v475_v14  ;;  %v561_v14 = vld [vmem:[%s1359_s25 + $0x18] sm:$0xff] }
  0xec   : > { %627 = vmatpush.msra.mxu3 %v561_v14 }
  0xf1   : > { %v471_v15 = vpop.f32.mrf.mxu0 }
  0xf2   : > { %v478_v16 = vsel %vm474_vm0, %v471_v15, -inf }
  0xf3   : > { %479 = vmax.xlane.f32.xlu0 %v478_v16 }
 0x15e   : > { %v477_v17 = vpop.xlane.xlu0 %476 }
 0x15f   : > { %v481_v18 = vsub.f32 %v468_v13, %v477_v17  ;;  %v560_v13 = vld [vmem:[%s1359_s25 + $0x10] sm:$0xff] }
 0x160   : > { %604 = vmatpush.msrb.mxu1 %v560_v13  ;;  %864 = vmatpush.msra.mxu2 %v560_v13 }
 0x161   : > { %v483_v19 = vmul.f32 1.442695, %v481_v18 }
 0x163   : > { %989 = vpow2.f32 %v483_v19  ;;  %v558_v19 = vld [vmem:[%s1359_s25] sm:$0xff] }
 0x164   : > { %605 = vmatpush.msrb.mxu1 %v558_v19  ;;  %865 = vmatpush.msra.mxu2 %v558_v19 }
 0x166   : > { %v480_v20 = vpop.xlane.xlu0 %479 }
 0x167   : > { %v482_v21 = vsub.f32 %v471_v15, %v480_v20  ;;  %v559_v20 = vld [vmem:[%s1359_s25 + $0x8] sm:$0xff] }
 0x168   : > { %628 = vmatpush.msra.mxu3 %v559_v20 }
 0x169   : > { %v1368_v22 = vpop.eup %989  ;;  %v485_v23 = vmul.f32 1.442695, %v482_v21 }
 0x16a   : > { %v487_v24 = vsel %vm474_vm0, %v1368_v22, 0.0 }
 0x16b   : > { %991 = vpow2.f32 %v485_v23  ;;  %488 = vadd.xlane.f32.xlu1 %v487_v24  ;;  %v554_v23 = vld [vmem:[#allocation2 + $0x10] sm:$0xff] }
 0x171   : > { %v1372_v25 = vpop.eup %991 }
 0x172   : > { %v490_v26 = vsel %vm474_vm0, %v1372_v25, 0.0 }
 0x173   : > { %491 = vadd.xlane.f32.xlu1 %v490_v26 }
 0x1de   : > { %v489_v35 = vpop.xlane.xlu1 %488 }
 0x1df   : > { %993 = vrcp.f32 %v489_v35  ;;  %v504_v52 = vand.u32 2147483648, %v489_v35  ;;  %v502_v54 = vand.u32 2147483647, %v489_v35  ;;  %vm498_vm2 = vweird.f32 %v489_v35 }
 0x1e1   : > { %v505_v61 = vor.u32 1.1754944e-38, %v504_v52  ;;  %vm503_vm4 = vcmp.eq.f32.partialorder %v502_v54, 8.507059e+37 }
 0x1e5   : > { %v994_v44 = vpop.eup %993 }
 0x1e6   : > { %v494_v45 = vmul.f32 %v994_v44, %v489_v35  ;;  %v1394_v46 = vpop.xlane.xlu1 %491  ;;  %vm499_vm1 = vweird.f32 %v994_v44 }
 0x1e7   : > { %995 = vrcp.f32 %v1394_v46  ;;  %vm500_vm3 = vmor %vm498_vm2, %vm499_vm1  ;;  %v519_v7 = vand.u32 2147483648, %v1394_v46  ;;  %v517_v9 = vand.u32 2147483647, %v1394_v46  ;;  %vm513_vm6 = vweird.f32 %v1394_v46 }
 0x1e8   : > { %v495_v49 = vsub.f32 1.0, %v494_v45 }
 0x1e9   : > { %v520_v15 = vor.u32 1.1754944e-38, %v519_v7  ;;  %vm518_vm8 = vcmp.eq.f32.partialorder %v517_v9, 8.507059e+37 }
 0x1ea   : > { %v496_v53 = vmul.f32 %v994_v44, %v495_v49 }
 0x1ec   : > { %v497_v57 = vadd.f32 %v994_v44, %v496_v53 }
 0x1ed   : > { %v996_v60 = vpop.eup %995 }
 0x1ee   : > { %v509_v62 = vmul.f32 %v996_v60, %v1394_v46  ;;  %v501_v63 = vsel %vm500_vm3, %v994_v44, %v497_v57  ;;  %vm514_vm5 = vweird.f32 %v996_v60 }
 0x1ef   : > { %v506_v2 = vsel %vm503_vm4, %v505_v61, %v501_v63  ;;  %vm515_vm7 = vmor %vm513_vm6, %vm514_vm5 }
 0x1f0   : > { %v510_v3 = vsub.f32 1.0, %v509_v62  ;;  %v507_v4 = vmul.f32 %v1368_v22, %v506_v2 }
 0x1f2   : > { %v511_v8 = vmul.f32 %v996_v60, %v510_v3  ;;  %840 = vmatmul.msk.f32.vlgmr.msra.gmra.mxu1 %vm474_vm0, %v507_v4 }
 0x1f4   : > { %v512_v12 = vadd.f32 %v996_v60, %v511_v8 }
 0x1f6   : > { %v516_v16 = vsel %vm515_vm7, %v996_v60, %v512_v12 }
 0x1f7   : > { %v521_v17 = vsel %vm518_vm8, %v520_v15, %v516_v16 }
 0x1f8   : > { %v522_v18 = vmul.f32 %v1372_v25, %v521_v17 }
 0x1fa   : > { %841 = vmatmul.msk.f32.gmra.mxu1 %vm474_vm0, %v522_v18 }
 0x26f   : > { %v548_v21 = vpop.f32.mrf.mxu1 }
 0x270   : > { %606 = vmatmul.f32.vlgmr.msrb.gmra.mxu1 %v548_v21  ;;  %629 = vmatmul.f32.vlgmr.msra.gmra.mxu3 %v548_v21 }
 0x277   : > { %v551_v22 = vpop.f32.mrf.mxu1 }
 0x278   : > { %609 = vmatmul.f32.vlgmr.msra.gmra.mxu2 %v551_v22  ;;  %632 = vmatmul.f32.gmra.mxu3 %v551_v22 }
 0x2ed   : > { %v607_v24 = vpop.f32.mrf.mxu1 }
 0x2ee   : > { %v636_v26 = vadd.f32 %v607_v24, %v554_v23 }
 0x2f0   : > { %640 = vst [vmem:[#allocation2 + $0x10] sm:$0xff] %v636_v26 }
 0x2f3   : > { %v630_v25 = vpop.f32.mrf.mxu3 }
 0x2f4   : > { %v637_v28 = vadd.f32 %v630_v25, %v555_v27 }
 0x2f6   : > { %641 = vst [vmem:[#allocation2] sm:$0xff] %v637_v28 }
 0x2fb   : > { %v610_v31 = vpop.f32.mrf.mxu2  ;;  %v633_v32 = vpop.f32.mrf.mxu3  ;;  %647 = sbr.rel (%p842_p11) target bundleno = 778 (0x30a), region = 162 }
 0x2fc   : > { %v638_v33 = vadd.f32 %v610_v31, %v556_v29  ;;  %v639_v34 = vadd.f32 %v633_v32, %v557_v30 }
 0x2fe   : > { %642 = vst [vmem:[#allocation2 + $0x18] sm:$0xff] %v638_v33 }
 0x2ff   : > { %643 = vst [vmem:[#allocation2 + $0x8] sm:$0xff] %v639_v34 }
 0x300   : > { %v648_v35 = vld [vmem:[#allocation2 + $0x10] sm:$0xff]  ;;  %v652_v36 = vld [vmem:[%s1534_s5] sm:$0x3] }
 0x301   : > { %v649_v37 = vld [vmem:[#allocation2] sm:$0xff]  ;;  %v654_v38 = vperm.slane %v652_v36, 0  ;;  %v655_v39 = vperm.slane %v652_v36, 1 }
 0x303   : > { %v658_v42 = vadd.f32 %v654_v38, %v648_v35  ;;  %v659_v43 = vadd.f32 %v655_v39, %v649_v37 }
 0x305   : > { %v650_v40 = vld [vmem:[#allocation2 + $0x18] sm:$0xff]  ;;  %662 = vst [vmem:[%s1363_s11] sm:$0xff] %v658_v42 }
 0x306   : > { %v651_v41 = vld [vmem:[#allocation2 + $0x8] sm:$0xff]  ;;  %v660_v44 = vadd.f32 %v654_v38, %v650_v40  ;;  %663 = vst [vmem:[%s1363_s11 + $0x8] sm:$0xff] %v659_v43 }
 0x307   : > { %v661_v45 = vadd.f32 %v655_v39, %v651_v41 }
 0x308   : > { %664 = vst [vmem:[%s1363_s11 + $0x10] sm:$0xff] %v660_v44 }
 0x309   : > { %665 = vst [vmem:[%s1363_s11 + $0x18] sm:$0xff] %v661_v45 }
 0x30a PF: > { %s1535_s15 = sld [smem:[#allocation11_spill]]  ;;  %s679_s27 = sshll.u32 %s1363_s11, 4  ;;  %s680_s27 = int_to_ptr.vmem [resolvable:$true] %s679_s27 }
 0x30b   : > { %s1536_s13 = sld [smem:[#allocation20_spill]]  ;;  %s667_s10 = scalar_lea.sflag [#allocation7], %s425_s12 }
 0x310   : > { %s849_s4 = sshll.u32 %s1535_s15, 5 }
 0x311   : > { %s678_s3 = scalar_lea.hbm %s1536_s13, %s849_s4  ;;  %s1017_s21 = scalar_lea.hbm %s1536_s13, 64 }
 0x312   : > { %s681_s26 = sshll.u32 %s678_s3, 4  ;;  %s682_s26 = int_to_ptr.hbm [resolvable:$true] %s681_s26 }
 0x313   : > { %s1011_s25 = sshra.s32 %s682_s26, 4  ;;  %s1012_s25 = int_to_ptr.hbm [resolvable:$true] %s1011_s25 }
 0x314   : > { %s1013_s23 = scalar_lea.hbm %s1012_s25, 32  ;;  %p1018_p1 = scmp.lt.s32.totalorder %s1012_s25, %s1536_s13 }
 0x315   : > { %p1014_p12 = scmp.ne.s32.totalorder %s1012_s25, %s1013_s23  ;;  %p1019_p4 = scmp.lt.s32.totalorder %s1017_s21, %s1013_s23 }
 0x317   : > { %p1015_p13 = pnand %p1014_p12, %p1310_p5  ;;  %p1020_p2 = por %p1019_p4, %p1018_p1 }
 0x319   : > { %p1016_p0 = pneg %p1015_p13 }
 0x31b   : > { %p1021_p3 = pnand %p1020_p2, %p1016_p0 }
 0x31d   : > { %1024 = shalt.err (!%p1021_p3)
}
 0x31e   : > { %s1142_s12 = smov 256   ;;  %s1143_s11 = smov 16  }
 0x31f   : > { %867 = dma.vmem_to_hbm [thread:$0]  (%p1310_p5), %s680_s27, 512, %s682_s26, %s667_s10, %s1142_s12, %s1142_s12, %s1143_s11  }
 0x320 PF: > { %p873_p7 = scmp.ge.s32.totalorder %s1139_s6, 2  ;;  %s696_s15 = sand.u32 1, %s1087_s18  }
 0x321   : > { %s697_s4 = scalar_lea.sflag [#allocation7], %s696_s15 }
 0x322   : > { %p870_p8 = pnand %p873_p7, %p1314_p6 }
 0x324   : > { %p871_p9 = pneg %p870_p8 }
 0x326   : > { %1082 = dma.done.wait (%p871_p9), %s697_s4, 512  }
 0x327   : > { %1084 = vsyncadd (%p871_p9), %s697_s4, 4294966784  ;;  %s18_s6 = sadd.s32 1, %s1139_s6   ;;  %s1538_s16 = sld [smem:[#allocation16_spill]] }
 0x328   : > { %p1453_p10 = scmp.ge.s32.totalorder %s18_s6, 6   ;;  %s1539_s7 = sld [smem:[#allocation15_spill]] }
 0x329   : > { %s1540_s25 = sld [smem:[#allocation9_spill]]  ;;  %s1544_s18 = smov %s1091_s19 }
 0x32a   : > { %s1541_s26 = sld [smem:[#allocation14_spill]]  ;;  %s1545_s19 = smov %s1095_s20 }
 0x32b   : > { %s1542_s8 = sld [smem:[#allocation12_spill]]  ;;  %s1546_s20 = smov %s1300_s9 }
 0x32c   : > { %s1543_s3 = sld [smem:[#allocation13_spill]]  ;;  %s1547_s21 = smov %s1103_s22 }
 0x32d   : > { %s1548_s22 = smov %s1538_s16  ;;  %s1549_s23 = smov %s1111_s24 }
 0x32e   : > { %s1550_s24 = smov %s1539_s7  ;;  %s1551_s27 = smov %s1131_s29 }
 0x32f   : > { %s1552_s28 = smov %s1135_s30  ;;  %17 = sbr.rel (!%p1453_p10) target bundleno = 13 (0xd), region = 221 }
 0x331   : > { %s1553_s29 = smov %s1542_s8 }
 0x332   : > { %s1554_s30 = smov %s1543_s3 }
 0x334   :  { %703 = vsyncpa [#allocation7], 1 }
 0x335   :  { %705 = vsyncpa [#allocation7 + $0x1], 1 }

// kernel: multihead_self_attention_block.2
= control target key start
LH: loop header
LB: loop body
LE: loop exit
PB: predicated region body
PF: predicated region fallthrough
CT: control target
= control target key end

     0   :  { %v756_v12 = vmov 256.0   ;;  %s1674_s0 = inlined_call_operand.vmem [shape: f32[32,256], index: 0, kind: input, shape index: {}]   ;;  %s1675_s3 = inlined_call_operand.vmem [shape: f32[256,768], index: 3, kind: input, shape index: {}]   ;;  %s1676_s1 = inlined_call_operand.vmem [shape: f32[1,256], index: 1, kind: input, shape index: {}]   ;;  %s1677_s2 = inlined_call_operand.vmem [shape: f32[1,256], index: 2, kind: input, shape index: {}]   ;;  %s1678_s4 = inlined_call_operand.vmem [shape: f32[1,768], index: 4, kind: input, shape index: {}]   ;;  %s1679_s5 = inlined_call_operand.vmem [shape: f32[32,768], index: 5, kind: output, shape index: {}]  }
   0x1   :  { %v24_v0 = vld [vmem:[%s1674_s0 + $0x20] sm:$0xff]  ;;  %v25_v1 = vld [vmem:[%s1674_s0 + $0x28] sm:$0xff]  ;;  %v26_v6 = vld [vmem:[%s1674_s0 + $0x30] sm:$0xff]  ;;  %746 = vrcp.f32 %v756_v12 }
   0x2   :  { %v20_v2 = vld [vmem:[%s1674_s0] sm:$0xff]  ;;  %v34_v3 = vadd.f32 %v25_v1, %v24_v0  ;;  %v21_v4 = vld [vmem:[%s1674_s0 + $0x8] sm:$0xff]  ;;  %v27_v7 = vld [vmem:[%s1674_s0 + $0x38] sm:$0xff] }
   0x3   :  { %v28_v5 = vadd.f32 %v21_v4, %v20_v2  ;;  %v22_v8 = vld [vmem:[%s1674_s0 + $0x10] sm:$0xff]  ;;  %v23_v9 = vld [vmem:[%s1674_s0 + $0x18] sm:$0xff]  ;;  %v37_v10 = vadd.f32 %v27_v7, %v26_v6  ;;  %v247_v20 = vld [vmem:[%s1675_s3 + $0x2a0] sm:$0xff] }
   0x4   :  { %35 = vadd.xlane.f32.xlu1 %v34_v3  ;;  %v31_v11 = vadd.f32 %v23_v9, %v22_v8  ;;  %v253_v16 = vld [vmem:[%s1675_s3 + $0x2d0] sm:$0xff]  ;;  %v254_v18 = vld [vmem:[%s1675_s3 + $0x2d8] sm:$0xff]  ;;  %v343_v21 = vld [vmem:[%s1675_s3 + $0x5a0] sm:$0xff] }
   0x5   :  { %29 = vadd.xlane.f32.xlu0 %v28_v5  ;;  %v349_v17 = vld [vmem:[%s1675_s3 + $0x5d0] sm:$0xff]  ;;  %369 = vmatpush.msra.mxu0 %v253_v16  ;;  %v350_v19 = vld [vmem:[%s1675_s3 + $0x5d8] sm:$0xff]  ;;  %v248_v22 = vld [vmem:[%s1675_s3 + $0x2a8] sm:$0xff] }
   0x6   :  { %398 = vmatpush.msra.mxu1 %v349_v17  ;;  %427 = vmatpush.msra.mxu2 %v254_v18  ;;  %v344_v23 = vld [vmem:[%s1675_s3 + $0x5a8] sm:$0xff]  ;;  %v241_v55 = vld [vmem:[%s1675_s3 + $0x270] sm:$0xff]  ;;  %v242_v57 = vld [vmem:[%s1675_s3 + $0x278] sm:$0xff] }
   0x7   :  { %v747_v13 = vpop.eup %746  ;;  %456 = vmatpush.msra.mxu3 %v350_v19  ;;  %370 = vmatpush.msra.mxu0 %v247_v20  ;;  %v337_v56 = vld [vmem:[%s1675_s3 + $0x570] sm:$0xff]  ;;  %v338_v58 = vld [vmem:[%s1675_s3 + $0x578] sm:$0xff]  ;;  %v235_v59 = vld [vmem:[%s1675_s3 + $0x240] sm:$0xff] }
   0x8   :  { %v41_v14 = vmul.f32 256.0, %v747_v13  ;;  %399 = vmatpush.msra.mxu1 %v343_v21  ;;  %428 = vmatpush.msra.mxu2 %v248_v22  ;;  %vm45_vm0 = vweird.f32 %v747_v13  ;;  %v331_v60 = vld [vmem:[%s1675_s3 + $0x540] sm:$0xff]  ;;  %v236_v61 = vld [vmem:[%s1675_s3 + $0x248] sm:$0xff]  ;;  %v229_v63 = vld [vmem:[%s1675_s3 + $0x210] sm:$0xff] }
   0x9   :  { %457 = vmatpush.msra.mxu3 %v344_v23  ;;  %371 = vmatpush.msra.mxu0 %v241_v55  ;;  %v332_v62 = vld [vmem:[%s1675_s3 + $0x548] sm:$0xff]  ;;  %v223_v3 = vld [vmem:[%s1675_s3 + $0x1e0] sm:$0xff]  ;;  %v301_v16 = vld [vmem:[%s1675_s3 + $0x450] sm:$0xff] }
   0xa   :  { %v42_v15 = vsub.f32 1.0, %v41_v14  ;;  %400 = vmatpush.msra.mxu1 %v337_v56  ;;  %429 = vmatpush.msra.mxu2 %v242_v57  ;;  %v224_v5 = vld [vmem:[%s1675_s3 + $0x1e8] sm:$0xff]  ;;  %v307_v12 = vld [vmem:[%s1675_s3 + $0x480] sm:$0xff]  ;;  %v206_v17 = vld [vmem:[%s1675_s3 + $0x158] sm:$0xff] }
   0xb   :  { %458 = vmatpush.msra.mxu3 %v338_v58  ;;  %372 = vmatpush.msra.mxu0 %v235_v59  ;;  %v308_v14 = vld [vmem:[%s1675_s3 + $0x488] sm:$0xff]  ;;  %v302_v18 = vld [vmem:[%s1675_s3 + $0x458] sm:$0xff]  ;;  %v199_v19 = vld [vmem:[%s1675_s3 + $0x120] sm:$0xff] }
   0xc   :  { %38 = vadd.xlane.f32.xlu1 %v37_v10  ;;  %v43_v24 = vmul.f32 %v747_v13, %v42_v15  ;;  %401 = vmatpush.msra.mxu1 %v331_v60  ;;  %v314_v10 = vld [vmem:[%s1675_s3 + $0x4b8] sm:$0xff]  ;;  %v205_v15 = vld [vmem:[%s1675_s3 + $0x150] sm:$0xff]  ;;  %v295_v20 = vld [vmem:[%s1675_s3 + $0x420] sm:$0xff] }
   0xd   :  { %32 = vadd.xlane.f32.xlu0 %v31_v11  ;;  %430 = vmatpush.msra.mxu2 %v236_v61  ;;  %v211_v11 = vld [vmem:[%s1675_s3 + $0x180] sm:$0xff]  ;;  %v200_v21 = vld [vmem:[%s1675_s3 + $0x128] sm:$0xff]  ;;  %v193_v23 = vld [vmem:[%s1675_s3 + $0xf0] sm:$0xff] }
   0xe   :  { %v44_v25 = vadd.f32 %v747_v13, %v43_v24  ;;  %459 = vmatpush.msra.mxu3 %v332_v62  ;;  %373 = vmatpush.msra.mxu0 %v229_v63  ;;  %v296_v22 = vld [vmem:[%s1675_s3 + $0x428] sm:$0xff]  ;;  %v289_v24 = vld [vmem:[%s1675_s3 + $0x3f0] sm:$0xff]  ;;  %v255_v57 = vld [vmem:[%s1675_s3 + $0x2e0] sm:$0xff] }
   0xf   :  { %v260_v55 = vld [vmem:[%s1675_s3 + $0x308] sm:$0xff]  ;;  %v351_v58 = vld [vmem:[%s1675_s3 + $0x5e0] sm:$0xff]  ;;  %v250_v63 = vld [vmem:[%s1675_s3 + $0x2b8] sm:$0xff] }
  0x10   :  { %v835_v26 = vsel %vm45_vm0, %v747_v13, %v44_v25  ;;  %374 = vmatpush.msra.mxu0 %v223_v3  ;;  %v212_v13 = vld [vmem:[%s1675_s3 + $0x188] sm:$0xff]  ;;  %v194_v25 = vld [vmem:[%s1675_s3 + $0xf8] sm:$0xff] }
  0x11   :  { %v256_v56 = vld [vmem:[%s1675_s3 + $0x2e8] sm:$0xff]  ;;  %v346_v3 = vld [vmem:[%s1675_s3 + $0x5b8] sm:$0xff] }
  0x12   :  { %v352_v60 = vld [vmem:[%s1675_s3 + $0x5e8] sm:$0xff] }
  0x77   :  { %v36_v27 = vpop.xlane.xlu1 %35 }
  0x78   :  { %v49_v28 = vmul.f32 %v835_v26, %v36_v27  ;;  %v30_v29 = vpop.xlane.xlu0 %29  ;;  %v290_v27 = vld [vmem:[%s1675_s3 + $0x3f8] sm:$0xff] }
  0x79   :  { %v47_v30 = vmul.f32 %v835_v26, %v30_v29  ;;  %v283_v29 = vld [vmem:[%s1675_s3 + $0x3c0] sm:$0xff] }
  0x7a   :  { %v839_v31 = vsub.f32 %v24_v0, %v49_v28  ;;  %v841_v32 = vsub.f32 %v25_v1, %v49_v28  ;;  %v325_v0 = vld [vmem:[%s1675_s3 + $0x510] sm:$0xff]  ;;  %v230_v1 = vld [vmem:[%s1675_s3 + $0x218] sm:$0xff]  ;;  %v187_v28 = vld [vmem:[%s1675_s3 + $0xc0] sm:$0xff] }
  0x7b   :  { %v843_v33 = vsub.f32 %v20_v2, %v47_v30  ;;  %v845_v34 = vsub.f32 %v21_v4, %v47_v30  ;;  %402 = vmatpush.msra.mxu1 %v325_v0  ;;  %v326_v2 = vld [vmem:[%s1675_s3 + $0x518] sm:$0xff]  ;;  %431 = vmatpush.msra.mxu2 %v230_v1  ;;  %v319_v4 = vld [vmem:[%s1675_s3 + $0x4e0] sm:$0xff]  ;;  %v188_v30 = vld [vmem:[%s1675_s3 + $0xc8] sm:$0xff] }
  0x7c   :  { %v63_v35 = vmul.f32 %v839_v31, %v839_v31  ;;  %v64_v36 = vmul.f32 %v841_v32, %v841_v32  ;;  %460 = vmatpush.msra.mxu3 %v326_v2  ;;  %v249_v0 = vld [vmem:[%s1675_s3 + $0x2b0] sm:$0xff] }
  0x7d   :  { %v59_v37 = vmul.f32 %v843_v33, %v843_v33  ;;  %v60_v38 = vmul.f32 %v845_v34, %v845_v34  ;;  %403 = vmatpush.msra.mxu1 %v319_v4  ;;  %432 = vmatpush.msra.mxu2 %v224_v5  ;;  %v345_v1 = vld [vmem:[%s1675_s3 + $0x5b0] sm:$0xff]  ;;  %v244_v5 = vld [vmem:[%s1675_s3 + $0x288] sm:$0xff] }
  0x7e   :  { %v73_v39 = vadd.f32 %v64_v36, %v63_v35  ;;  %v284_v35 = vld [vmem:[%s1675_s3 + $0x3c8] sm:$0xff]  ;;  %v181_v36 = vld [vmem:[%s1675_s3 + $0x90] sm:$0xff] }
  0x7f   :  { %v39_v40 = vpop.xlane.xlu1 %38  ;;  %v67_v41 = vadd.f32 %v60_v38, %v59_v37  ;;  %v277_v37 = vld [vmem:[%s1675_s3 + $0x390] sm:$0xff]  ;;  %v182_v38 = vld [vmem:[%s1675_s3 + $0x98] sm:$0xff] }
  0x80   :  { %v50_v42 = vmul.f32 %v835_v26, %v39_v40  ;;  %v33_v43 = vpop.xlane.xlu0 %32  ;;  %74 = vadd.xlane.f32.xlu0 %v73_v39  ;;  %v278_v39 = vld [vmem:[%s1675_s3 + $0x398] sm:$0xff]  ;;  %v175_v40 = vld [vmem:[%s1675_s3 + $0x60] sm:$0xff] }
  0x81   :  { %v48_v44 = vmul.f32 %v835_v26, %v33_v43  ;;  %68 = vadd.xlane.f32.xlu2 %v67_v41  ;;  %v271_v41 = vld [vmem:[%s1675_s3 + $0x360] sm:$0xff]  ;;  %v272_v43 = vld [vmem:[%s1675_s3 + $0x368] sm:$0xff] }
  0x82   :  { %v857_v45 = vsub.f32 %v26_v6, %v50_v42  ;;  %v859_v46 = vsub.f32 %v27_v7, %v50_v42  ;;  %v320_v6 = vld [vmem:[%s1675_s3 + $0x4e8] sm:$0xff]  ;;  %v217_v7 = vld [vmem:[%s1675_s3 + $0x1b0] sm:$0xff] }
  0x83   :  { %v861_v47 = vsub.f32 %v22_v8, %v48_v44  ;;  %v863_v48 = vsub.f32 %v23_v9, %v48_v44  ;;  %461 = vmatpush.msra.mxu3 %v320_v6  ;;  %v313_v8 = vld [vmem:[%s1675_s3 + $0x4b0] sm:$0xff]  ;;  %v218_v9 = vld [vmem:[%s1675_s3 + $0x1b8] sm:$0xff]  ;;  %375 = vmatpush.msra.mxu0 %v217_v7  ;;  %v176_v42 = vld [vmem:[%s1675_s3 + $0x68] sm:$0xff] }
  0x84   :  { %v65_v49 = vmul.f32 %v857_v45, %v857_v45  ;;  %v66_v50 = vmul.f32 %v859_v46, %v859_v46  ;;  %404 = vmatpush.msra.mxu1 %v313_v8  ;;  %433 = vmatpush.msra.mxu2 %v218_v9  ;;  %v169_v44 = vld [vmem:[%s1675_s3 + $0x30] sm:$0xff]  ;;  %v243_v6 = vld [vmem:[%s1675_s3 + $0x280] sm:$0xff]  ;;  %v340_v9 = vld [vmem:[%s1675_s3 + $0x588] sm:$0xff] }
  0x85   :  { %v61_v51 = vmul.f32 %v861_v47, %v861_v47  ;;  %v62_v52 = vmul.f32 %v863_v48, %v863_v48  ;;  %462 = vmatpush.msra.mxu3 %v314_v10  ;;  %376 = vmatpush.msra.mxu0 %v211_v11  ;;  %v339_v7 = vld [vmem:[%s1675_s3 + $0x580] sm:$0xff]  ;;  %v238_v10 = vld [vmem:[%s1675_s3 + $0x258] sm:$0xff]  ;;  %v237_v11 = vld [vmem:[%s1675_s3 + $0x250] sm:$0xff] }
  0x86   :  { %v76_v53 = vadd.f32 %v66_v50, %v65_v49  ;;  %405 = vmatpush.msra.mxu1 %v307_v12  ;;  %434 = vmatpush.msra.mxu2 %v212_v13  ;;  %v265_v49 = vld [vmem:[%s1675_s3 + $0x330] sm:$0xff]  ;;  %v170_v50 = vld [vmem:[%s1675_s3 + $0x38] sm:$0xff] }
  0x87   :  { %v70_v54 = vadd.f32 %v62_v52, %v61_v51  ;;  %463 = vmatpush.msra.mxu3 %v308_v14  ;;  %377 = vmatpush.msra.mxu0 %v205_v15  ;;  %v266_v51 = vld [vmem:[%s1675_s3 + $0x338] sm:$0xff]  ;;  %v163_v52 = vld [vmem:[%s1675_s3] sm:$0xff]  ;;  %v333_v12 = vld [vmem:[%s1675_s3 + $0x550] sm:$0xff] }
  0x88   :  { %77 = vadd.xlane.f32.xlu1 %v76_v53  ;;  %406 = vmatpush.msra.mxu1 %v301_v16  ;;  %v259_v53 = vld [vmem:[%s1675_s3 + $0x300] sm:$0xff]  ;;  %v334_v13 = vld [vmem:[%s1675_s3 + $0x558] sm:$0xff]  ;;  %v232_v14 = vld [vmem:[%s1675_s3 + $0x228] sm:$0xff] }
  0x89   :  { %71 = vadd.xlane.f32.xlu2 %v70_v54  ;;  %435 = vmatpush.msra.mxu2 %v206_v17  ;;  %v164_v54 = vld [vmem:[%s1675_s3 + $0x8] sm:$0xff]  ;;  %v231_v15 = vld [vmem:[%s1675_s3 + $0x220] sm:$0xff] }
  0x8a   :  { %464 = vmatpush.msra.mxu3 %v302_v18  ;;  %378 = vmatpush.msra.mxu0 %v199_v19  ;;  %v327_v16 = vld [vmem:[%s1675_s3 + $0x520] sm:$0xff]  ;;  %v328_v18 = vld [vmem:[%s1675_s3 + $0x528] sm:$0xff]  ;;  %v226_v19 = vld [vmem:[%s1675_s3 + $0x1f8] sm:$0xff] }
  0x8b   :  { %407 = vmatpush.msra.mxu1 %v295_v20  ;;  %436 = vmatpush.msra.mxu2 %v200_v21  ;;  %v225_v20 = vld [vmem:[%s1675_s3 + $0x1f0] sm:$0xff] }
  0x8c   :  { %465 = vmatpush.msra.mxu3 %v296_v22  ;;  %379 = vmatpush.msra.mxu0 %v193_v23  ;;  %v321_v23 = vld [vmem:[%s1675_s3 + $0x4f0] sm:$0xff] }
  0x8d   :  { %408 = vmatpush.msra.mxu1 %v289_v24  ;;  %437 = vmatpush.msra.mxu2 %v194_v25  ;;  %v322_v24 = vld [vmem:[%s1675_s3 + $0x4f8] sm:$0xff]  ;;  %v220_v25 = vld [vmem:[%s1675_s3 + $0x1c8] sm:$0xff] }
  0x8e   :  { %466 = vmatpush.msra.mxu3 %v290_v27  ;;  %380 = vmatpush.msra.mxu0 %v187_v28  ;;  %v219_v28 = vld [vmem:[%s1675_s3 + $0x1c0] sm:$0xff] }
  0x8f   :  { %409 = vmatpush.msra.mxu1 %v283_v29  ;;  %438 = vmatpush.msra.mxu2 %v188_v30  ;;  %v315_v29 = vld [vmem:[%s1675_s3 + $0x4c0] sm:$0xff]  ;;  %v316_v30 = vld [vmem:[%s1675_s3 + $0x4c8] sm:$0xff] }
  0x90   :  { %467 = vmatpush.msra.mxu3 %v284_v35  ;;  %381 = vmatpush.msra.mxu0 %v181_v36 }
  0x91   :  { %410 = vmatpush.msra.mxu1 %v277_v37  ;;  %439 = vmatpush.msra.mxu2 %v182_v38  ;;  %v213_v37 = vld [vmem:[%s1675_s3 + $0x190] sm:$0xff] }
  0x92   :  { %468 = vmatpush.msra.mxu3 %v278_v39  ;;  %382 = vmatpush.msra.mxu0 %v175_v40 }
  0x93   :  { %411 = vmatpush.msra.mxu1 %v271_v41  ;;  %440 = vmatpush.msra.mxu2 %v176_v42  ;;  %v309_v41 = vld [vmem:[%s1675_s3 + $0x490] sm:$0xff]  ;;  %v310_v42 = vld [vmem:[%s1675_s3 + $0x498] sm:$0xff] }
  0x94   :  { %469 = vmatpush.msra.mxu3 %v272_v43  ;;  %383 = vmatpush.msra.mxu0 %v169_v44 }
  0x95   :  { %412 = vmatpush.msra.mxu1 %v265_v49  ;;  %441 = vmatpush.msra.mxu2 %v170_v50  ;;  %v208_v49 = vld [vmem:[%s1675_s3 + $0x168] sm:$0xff]  ;;  %v207_v50 = vld [vmem:[%s1675_s3 + $0x160] sm:$0xff] }
  0x96   :  { %470 = vmatpush.msra.mxu3 %v266_v51  ;;  %384 = vmatpush.msra.mxu0 %v163_v52  ;;  %v303_v51 = vld [vmem:[%s1675_s3 + $0x460] sm:$0xff] }
  0x97   :  { %413 = vmatpush.msra.mxu1 %v259_v53  ;;  %442 = vmatpush.msra.mxu2 %v164_v54  ;;  %v304_v53 = vld [vmem:[%s1675_s3 + $0x468] sm:$0xff]  ;;  %v202_v54 = vld [vmem:[%s1675_s3 + $0x138] sm:$0xff] }
  0x98   :  { %471 = vmatpush.msra.mxu3 %v260_v55  ;;  %485 = vmatpush.msrb.mxu0 %v255_v57  ;;  %v201_v55 = vld [vmem:[%s1675_s3 + $0x130] sm:$0xff] }
  0x99   :  { %543 = vmatpush.msrb.mxu2 %v256_v56  ;;  %514 = vmatpush.msrb.mxu1 %v351_v58  ;;  %v297_v57 = vld [vmem:[%s1675_s3 + $0x430] sm:$0xff]  ;;  %v298_v58 = vld [vmem:[%s1675_s3 + $0x438] sm:$0xff] }
  0x9a   :  { %572 = vmatpush.msrb.mxu3 %v352_v60  ;;  %486 = vmatpush.msrb.mxu0 %v249_v0  ;;  %v195_v60 = vld [vmem:[%s1675_s3 + $0x100] sm:$0xff] }
  0x9b   :  { %544 = vmatpush.msrb.mxu2 %v250_v63  ;;  %515 = vmatpush.msrb.mxu1 %v345_v1  ;;  %v135_v0 = vld [vmem:[%s1676_s1] sm:$0x3] }
  0x9c   :  { %573 = vmatpush.msrb.mxu3 %v346_v3  ;;  %487 = vmatpush.msrb.mxu0 %v243_v6  ;;  %v189_v3 = vld [vmem:[%s1675_s3 + $0xd0] sm:$0xff]  ;;  %v149_v6 = vld [vmem:[%s1677_s2] sm:$0x3] }
  0x9d   :  { %545 = vmatpush.msrb.mxu2 %v244_v5  ;;  %516 = vmatpush.msrb.mxu1 %v339_v7 }
  0x9e   :  { %574 = vmatpush.msrb.mxu3 %v340_v9  ;;  %488 = vmatpush.msrb.mxu0 %v237_v11  ;;  %v285_v9 = vld [vmem:[%s1675_s3 + $0x3d0] sm:$0xff] }
  0x9f   :  { %546 = vmatpush.msrb.mxu2 %v238_v10  ;;  %517 = vmatpush.msrb.mxu1 %v333_v12 }
  0xa0   :  { %575 = vmatpush.msrb.mxu3 %v334_v13  ;;  %489 = vmatpush.msrb.mxu0 %v231_v15  ;;  %v286_v13 = vld [vmem:[%s1675_s3 + $0x3d8] sm:$0xff]  ;;  %v1230_v15 = vperm.slane %v135_v0, 1 }
  0xa1   :  { %547 = vmatpush.msrb.mxu2 %v232_v14  ;;  %518 = vmatpush.msrb.mxu1 %v327_v16  ;;  %v1228_v14 = vperm.slane %v135_v0, 0 }
  0xa2   :  { %576 = vmatpush.msrb.mxu3 %v328_v18  ;;  %490 = vmatpush.msrb.mxu0 %v225_v20  ;;  %v184_v18 = vld [vmem:[%s1675_s3 + $0xa8] sm:$0xff]  ;;  %v279_v20 = vld [vmem:[%s1675_s3 + $0x3a0] sm:$0xff] }
  0xa3   :  { %548 = vmatpush.msrb.mxu2 %v226_v19  ;;  %519 = vmatpush.msrb.mxu1 %v321_v23  ;;  %v183_v19 = vld [vmem:[%s1675_s3 + $0xa0] sm:$0xff] }
  0xa4   :  { %577 = vmatpush.msrb.mxu3 %v322_v24  ;;  %491 = vmatpush.msrb.mxu0 %v219_v28  ;;  %v177_v28 = vld [vmem:[%s1675_s3 + $0x70] sm:$0xff] }
  0xa5   :  { %549 = vmatpush.msrb.mxu2 %v220_v25  ;;  %520 = vmatpush.msrb.mxu1 %v315_v29  ;;  %v280_v25 = vld [vmem:[%s1675_s3 + $0x3a8] sm:$0xff] }
  0xa6   :  { %578 = vmatpush.msrb.mxu3 %v316_v30  ;;  %492 = vmatpush.msrb.mxu0 %v213_v37  ;;  %v274_v30 = vld [vmem:[%s1675_s3 + $0x378] sm:$0xff] }
  0xa7   :  { %521 = vmatpush.msrb.mxu1 %v309_v41  ;;  %v267_v41 = vld [vmem:[%s1675_s3 + $0x340] sm:$0xff] }
  0xa8   :  { %579 = vmatpush.msrb.mxu3 %v310_v42  ;;  %493 = vmatpush.msrb.mxu0 %v207_v50 }
  0xa9   :  { %522 = vmatpush.msrb.mxu1 %v303_v51 }
  0xaa   :  { %580 = vmatpush.msrb.mxu3 %v304_v53  ;;  %494 = vmatpush.msrb.mxu0 %v201_v55  ;;  %v268_v53 = vld [vmem:[%s1675_s3 + $0x348] sm:$0xff] }
  0xab   :  { %523 = vmatpush.msrb.mxu1 %v297_v57  ;;  %v258_v57 = vld [vmem:[%s1675_s3 + $0x2f8] sm:$0xff] }
  0xac   :  { %581 = vmatpush.msrb.mxu3 %v298_v58  ;;  %495 = vmatpush.msrb.mxu0 %v195_v60 }
  0xae   :  { %496 = vmatpush.msrb.mxu0 %v189_v3  ;;  %v347_v3 = vld [vmem:[%s1675_s3 + $0x5c0] sm:$0xff] }
  0xb0   :  { %497 = vmatpush.msrb.mxu0 %v183_v19  ;;  %v335_v19 = vld [vmem:[%s1675_s3 + $0x560] sm:$0xff] }
  0xb2   :  { %498 = vmatpush.msrb.mxu0 %v177_v28 }
  0xf3   :  { %v75_v59 = vpop.xlane.xlu0 %74 }
  0xf4   :  { %v69_v61 = vpop.xlane.xlu2 %68  ;;  %v81_v62 = vmul.f32 %v75_v59, %v835_v26  ;;  %v196_v59 = vld [vmem:[%s1675_s3 + $0x108] sm:$0xff] }
  0xf5   :  { %v79_v2 = vmul.f32 %v69_v61, %v835_v26  ;;  %v291_v61 = vld [vmem:[%s1675_s3 + $0x400] sm:$0xff] }
  0xf6   :  { %v1067_v4 = vadd.f32 1e-05, %v81_v62  ;;  %v292_v62 = vld [vmem:[%s1675_s3 + $0x408] sm:$0xff]  ;;  %524 = vmatpush.msrb.mxu1 %v291_v61  ;;  %v257_v61 = vld [vmem:[%s1675_s3 + $0x2f0] sm:$0xff] }
  0xf7   :  { %v1078_v8 = vadd.f32 1e-05, %v79_v2  ;;  %v190_v2 = vld [vmem:[%s1675_s3 + $0xd8] sm:$0xff]  ;;  %582 = vmatpush.msrb.mxu3 %v292_v62  ;;  %v353_v62 = vld [vmem:[%s1675_s3 + $0x5f0] sm:$0xff] }
  0xf8   :  { %748 = vrsqrt.f32 %v1067_v4  ;;  %525 = vmatpush.msrb.mxu1 %v285_v9  ;;  %vm113_vm4 = vweird.f32 %v1067_v4 }
  0xf9   :  { %750 = vrsqrt.f32 %v1078_v8  ;;  %vm93_vm2 = vweird.f32 %v1078_v8  ;;  %583 = vmatpush.msrb.mxu3 %v286_v13  ;;  %v342_v13 = vld [vmem:[%s1675_s3 + $0x598] sm:$0xff] }
  0xfa   :  { %526 = vmatpush.msrb.mxu1 %v279_v20 }
  0xfb   :  { %v78_v17 = vpop.xlane.xlu1 %77  ;;  %584 = vmatpush.msrb.mxu3 %v280_v25 }
  0xfc   :  { %v82_v21 = vmul.f32 %v78_v17, %v835_v26  ;;  %v72_v22 = vpop.xlane.xlu2 %71 }
  0xfd   :  { %v80_v27 = vmul.f32 %v72_v22, %v835_v26  ;;  %v214_v26 = vld [vmem:[%s1675_s3 + $0x198] sm:$0xff]  ;;  %585 = vmatpush.msrb.mxu3 %v274_v30  ;;  %v324_v30 = vld [vmem:[%s1675_s3 + $0x508] sm:$0xff] }
  0xfe   :  { %v1135_v35 = vpop.eup %748  ;;  %v1137_v36 = vadd.f32 1e-05, %v82_v21  ;;  %550 = vmatpush.msrb.mxu2 %v214_v26  ;;  %v1247_v21 = vperm.slane %v149_v6, 1  ;;  %v172_v26 = vld [vmem:[%s1675_s3 + $0x48] sm:$0xff] }
  0xff   :  { %v1145_v38 = vpop.eup %750  ;;  %v108_v39 = vmul.f32 %v1135_v35, %v1067_v4  ;;  %v1149_v40 = vadd.f32 1e-05, %v80_v27  ;;  %v178_v27 = vld [vmem:[%s1675_s3 + $0x78] sm:$0xff]  ;;  %vm114_vm5 = vweird.f32 %v1135_v35  ;;  %v165_v4 = vld [vmem:[%s1675_s3 + $0x10] sm:$0xff]  ;;  %586 = vmatpush.msrb.mxu3 %v268_v53 }
 0x100   :  { %v88_v43 = vmul.f32 %v1145_v38, %v1078_v8  ;;  %752 = vrsqrt.f32 %v1137_v36  ;;  %551 = vmatpush.msrb.mxu2 %v208_v49  ;;  %vm94_vm1 = vweird.f32 %v1145_v38  ;;  %v1234_v8 = vperm.slane %v149_v6, 0  ;;  %vm1290_vm7 = vmor %vm113_vm4, %vm114_vm5  ;;  %v210_v53 = vld [vmem:[%s1675_s3 + $0x178] sm:$0xff] }
 0x101   :  { %754 = vrsqrt.f32 %v1149_v40  ;;  %v109_v52 = vmul.f32 %v1135_v35, %v108_v39  ;;  %vm95_vm3 = vmor %vm93_vm2, %vm94_vm1  ;;  %v171_v39 = vld [vmem:[%s1675_s3 + $0x40] sm:$0xff]  ;;  %vm103_vm8 = vweird.f32 %v1149_v40  ;;  %vm123_vm10 = vweird.f32 %v1137_v36 }
 0x102   :  { %v89_v44 = vmul.f32 %v1145_v38, %v88_v43  ;;  %552 = vmatpush.msrb.mxu2 %v202_v54  ;;  %499 = vmatpush.msrb.mxu0 %v171_v39  ;;  %v166_v54 = vld [vmem:[%s1675_s3 + $0x18] sm:$0xff]  ;;  %v221_v39 = vld [vmem:[%s1675_s3 + $0x1d0] sm:$0xff] }
 0x103   :  { %v110_v7 = vmul.f32 0.5, %v109_v52 }
 0x104   :  { %v90_v56 = vmul.f32 0.5, %v89_v44  ;;  %553 = vmatpush.msrb.mxu2 %v196_v59  ;;  %500 = vmatpush.msrb.mxu0 %v165_v4  ;;  %v204_v4 = vld [vmem:[%s1675_s3 + $0x148] sm:$0xff] }
 0x105   :  { %v111_v24 = vsub.f32 1.5, %v110_v7 }
 0x106   :  { %v1199_v63 = vpop.eup %752  ;;  %v91_v1 = vsub.f32 1.5, %v90_v56  ;;  %554 = vmatpush.msrb.mxu2 %v190_v2  ;;  %v262_v56 = vld [vmem:[%s1675_s3 + $0x318] sm:$0xff]  ;;  %v251_v2 = vld [vmem:[%s1675_s3 + $0x2c0] sm:$0xff] }
 0x107   :  { %v1211_v5 = vpop.eup %754  ;;  %v118_v11 = vmul.f32 %v1199_v63, %v1137_v36  ;;  %v112_v49 = vmul.f32 %v1135_v35, %v111_v24  ;;  %587 = vmatpush.msrb.mxu3 %v262_v56  ;;  %vm124_vm11 = vweird.f32 %v1199_v63  ;;  %v245_v36 = vld [vmem:[%s1675_s3 + $0x290] sm:$0xff]  ;;  %v300_v56 = vld [vmem:[%s1675_s3 + $0x448] sm:$0xff] }
 0x108   :  { %v92_v10 = vmul.f32 %v1145_v38, %v91_v1  ;;  %v98_v12 = vmul.f32 %v1211_v5, %v1149_v40  ;;  %555 = vmatpush.msrb.mxu2 %v184_v18  ;;  %vm104_vm6 = vweird.f32 %v1211_v5  ;;  %v261_v40 = vld [vmem:[%s1675_s3 + $0x310] sm:$0xff]  ;;  %vm125_vm12 = vmor %vm123_vm10, %vm124_vm11  ;;  %v239_v18 = vld [vmem:[%s1675_s3 + $0x260] sm:$0xff] }
 0x109   :  { %v119_v29 = vmul.f32 %v1199_v63, %v118_v11  ;;  %vm105_vm9 = vmor %vm103_vm8, %vm104_vm6  ;;  %v116_v58 = vsel %vm1290_vm7, %v1135_v35, %v112_v49  ;;  %v354_v35 = vld [vmem:[%s1675_s3 + $0x5f8] sm:$0xff]  ;;  %v341_v11 = vld [vmem:[%s1675_s3 + $0x590] sm:$0xff] }
 0x10a   :  { %v96_v16 = vsel %vm95_vm3, %v1145_v38, %v92_v10  ;;  %v99_v17 = vmul.f32 %v1211_v5, %v98_v12  ;;  %556 = vmatpush.msrb.mxu2 %v178_v27  ;;  %v132_v6 = vmul.f32 %v116_v58, %v841_v32  ;;  %v246_v32 = vld [vmem:[%s1675_s3 + $0x298] sm:$0xff]  ;;  %v233_v24 = vld [vmem:[%s1675_s3 + $0x230] sm:$0xff]  ;;  %v311_v49 = vld [vmem:[%s1675_s3 + $0x4a0] sm:$0xff] }
 0x10b   :  { %v127_v22 = vmul.f32 %v96_v16, %v843_v33  ;;  %v128_v23 = vmul.f32 %v96_v16, %v845_v34  ;;  %v273_v34 = vld [vmem:[%s1675_s3 + $0x370] sm:$0xff]  ;;  %v120_v51 = vmul.f32 0.5, %v119_v29  ;;  %v240_v16 = vld [vmem:[%s1675_s3 + $0x268] sm:$0xff] }
 0x10c   :  { %v100_v33 = vmul.f32 0.5, %v99_v17  ;;  %527 = vmatpush.msrb.mxu1 %v273_v34  ;;  %557 = vmatpush.msrb.mxu2 %v172_v26  ;;  %v146_v17 = vmul.f32 %v1230_v15, %v132_v6  ;;  %v228_v34 = vld [vmem:[%s1675_s3 + $0x208] sm:$0xff]  ;;  %v222_v26 = vld [vmem:[%s1675_s3 + $0x1d8] sm:$0xff]  ;;  %v275_v6 = vld [vmem:[%s1675_s3 + $0x380] sm:$0xff] }
 0x10d   :  { %v141_v37 = vmul.f32 %v1228_v14, %v127_v22  ;;  %v142_v38 = vmul.f32 %v1230_v15, %v128_v23  ;;  %v121_v0 = vsub.f32 1.5, %v120_v51  ;;  %v336_v22 = vld [vmem:[%s1675_s3 + $0x568] sm:$0xff]  ;;  %v234_v23 = vld [vmem:[%s1675_s3 + $0x238] sm:$0xff] }
 0x10e   :  { %v101_v42 = vsub.f32 1.5, %v100_v33  ;;  %528 = vmatpush.msrb.mxu1 %v267_v41  ;;  %558 = vmatpush.msrb.mxu2 %v166_v54  ;;  %v1404_v27 = vadd.f32 %v1247_v21, %v146_v17  ;;  %v330_v33 = vld [vmem:[%s1675_s3 + $0x538] sm:$0xff]  ;;  %v317_v41 = vld [vmem:[%s1675_s3 + $0x4d0] sm:$0xff]  ;;  %v264_v17 = vld [vmem:[%s1675_s3 + $0x328] sm:$0xff] }
 0x10f   :  { %v1282_v43 = vadd.f32 %v1234_v8, %v141_v37  ;;  %v1285_v44 = vadd.f32 %v1247_v21, %v142_v38  ;;  %v122_v10 = vmul.f32 %v1199_v63, %v121_v0  ;;  %v306_v54 = vld [vmem:[%s1675_s3 + $0x478] sm:$0xff]  ;;  %v287_v0 = vld [vmem:[%s1675_s3 + $0x3e0] sm:$0xff] }
 0x110   :  { %v102_v52 = vmul.f32 %v1211_v5, %v101_v42  ;;  %529 = vmatpush.msrb.mxu1 %v261_v40  ;;  %v318_v42 = vld [vmem:[%s1675_s3 + $0x4d8] sm:$0xff]  ;;  %v203_v40 = vld [vmem:[%s1675_s3 + $0x140] sm:$0xff] }
 0x111   :  { %385 = vmatmul.f32.vlgmr.msra.gmra.mxu0 %v1282_v43  ;;  %414 = vmatmul.f32.vlgmr.msra.gmra.mxu1 %v1285_v44  ;;  %v126_v20 = vsel %vm125_vm12, %v1199_v63, %v122_v10  ;;  %v329_v63 = vld [vmem:[%s1675_s3 + $0x530] sm:$0xff]  ;;  %v276_v10 = vld [vmem:[%s1675_s3 + $0x388] sm:$0xff] }
 0x112   :  { %v106_v55 = vsel %vm105_vm9, %v1211_v5, %v102_v52  ;;  %443 = vmatmul.f32.vlgmr.msra.gmra.mxu2 %v1282_v43  ;;  %472 = vmatmul.f32.vlgmr.msra.gmra.mxu3 %v1285_v44  ;;  %v131_v5 = vmul.f32 %v116_v58, %v839_v31  ;;  %v348_v31 = vld [vmem:[%s1675_s3 + $0x5c8] sm:$0xff]  ;;  %v133_v28 = vmul.f32 %v126_v20, %v857_v45  ;;  %v227_v45 = vld [vmem:[%s1675_s3 + $0x200] sm:$0xff]  ;;  %v197_v58 = vld [vmem:[%s1675_s3 + $0x110] sm:$0xff] }
 0x113   :  { %v129_v59 = vmul.f32 %v106_v55, %v861_v47  ;;  %v130_v60 = vmul.f32 %v106_v55, %v863_v48  ;;  %v252_v47 = vld [vmem:[%s1675_s3 + $0x2c8] sm:$0xff]  ;;  %659 = vmatpush.msra.mxu2 %v258_v57  ;;  %601 = vmatpush.msra.mxu0 %v257_v61  ;;  %v134_v29 = vmul.f32 %v126_v20, %v859_v46  ;;  %v323_v46 = vld [vmem:[%s1675_s3 + $0x500] sm:$0xff]  ;;  %v198_v57 = vld [vmem:[%s1675_s3 + $0x118] sm:$0xff] }
 0x114   :  { %630 = vmatpush.msra.mxu1 %v353_v62  ;;  %688 = vmatpush.msra.mxu3 %v354_v35  ;;  %v145_v12 = vmul.f32 %v1228_v14, %v131_v5  ;;  %v147_v37 = vmul.f32 %v1228_v14, %v133_v28  ;;  %v312_v52 = vld [vmem:[%s1675_s3 + $0x4a8] sm:$0xff]  ;;  %v299_v55 = vld [vmem:[%s1675_s3 + $0x440] sm:$0xff] }
 0x115   :  { %v143_v48 = vmul.f32 %v1228_v14, %v129_v59  ;;  %v144_v1 = vmul.f32 %v1230_v15, %v130_v60  ;;  %660 = vmatpush.msra.mxu2 %v252_v47  ;;  %602 = vmatpush.msra.mxu0 %v251_v2  ;;  %v148_v38 = vmul.f32 %v1230_v15, %v134_v29  ;;  %v216_v14 = vld [vmem:[%s1675_s3 + $0x1a8] sm:$0xff]  ;;  %v215_v15 = vld [vmem:[%s1675_s3 + $0x1a0] sm:$0xff]  ;;  %v293_v59 = vld [vmem:[%s1675_s3 + $0x410] sm:$0xff] }
 0x116   :  { %631 = vmatpush.msra.mxu1 %v347_v3  ;;  %689 = vmatpush.msra.mxu3 %v348_v31  ;;  %v1401_v25 = vadd.f32 %v1234_v8, %v145_v12  ;;  %v1451_v50 = vadd.f32 %v1234_v8, %v147_v37  ;;  %v294_v60 = vld [vmem:[%s1675_s3 + $0x418] sm:$0xff]  ;;  %v192_v61 = vld [vmem:[%s1675_s3 + $0xe8] sm:$0xff]  ;;  %v191_v62 = vld [vmem:[%s1675_s3 + $0xe0] sm:$0xff] }
 0x117   :  { %v1351_v7 = vadd.f32 %v1234_v8, %v143_v48  ;;  %v1354_v9 = vadd.f32 %v1247_v21, %v144_v1  ;;  %661 = vmatpush.msra.mxu2 %v246_v32  ;;  %603 = vmatpush.msra.mxu0 %v245_v36  ;;  %v1454_v51 = vadd.f32 %v1247_v21, %v148_v38  ;;  %v209_v8 = vld [vmem:[%s1675_s3 + $0x170] sm:$0xff]  ;;  %v288_v35 = vld [vmem:[%s1675_s3 + $0x3e8] sm:$0xff]  ;;  %v186_v47 = vld [vmem:[%s1675_s3 + $0xb8] sm:$0xff] }
 0x118   :  { %632 = vmatpush.msra.mxu1 %v341_v11  ;;  %690 = vmatpush.msra.mxu3 %v342_v13  ;;  %v305_v21 = vld [vmem:[%s1675_s3 + $0x470] sm:$0xff]  ;;  %v282_v2 = vld [vmem:[%s1675_s3 + $0x3b8] sm:$0xff]  ;;  %v180_v3 = vld [vmem:[%s1675_s3 + $0x88] sm:$0xff] }
 0x119   :  { %388 = vmatmul.f32.gmra.mxu0 %v1351_v7  ;;  %417 = vmatmul.f32.gmra.mxu1 %v1354_v9  ;;  %v185_v48 = vld [vmem:[%s1675_s3 + $0xb0] sm:$0xff]  ;;  %v179_v5 = vld [vmem:[%s1675_s3 + $0x80] sm:$0xff]  ;;  %v174_v31 = vld [vmem:[%s1675_s3 + $0x58] sm:$0xff] }
 0x11a   :  { %446 = vmatmul.f32.gmra.mxu2 %v1351_v7  ;;  %475 = vmatmul.f32.gmra.mxu3 %v1354_v9  ;;  %v281_v1 = vld [vmem:[%s1675_s3 + $0x3b0] sm:$0xff]  ;;  %v270_v11 = vld [vmem:[%s1675_s3 + $0x358] sm:$0xff]  ;;  %v168_v12 = vld [vmem:[%s1675_s3 + $0x28] sm:$0xff] }
 0x11b   :  { %662 = vmatpush.msra.mxu2 %v240_v16  ;;  %604 = vmatpush.msra.mxu0 %v239_v18  ;;  %v173_v32 = vld [vmem:[%s1675_s3 + $0x50] sm:$0xff]  ;;  %v167_v13 = vld [vmem:[%s1675_s3 + $0x20] sm:$0xff] }
 0x11c   :  { %633 = vmatpush.msra.mxu1 %v335_v19  ;;  %691 = vmatpush.msra.mxu3 %v336_v22  ;;  %v269_v36 = vld [vmem:[%s1675_s3 + $0x350] sm:$0xff]  ;;  %v263_v16 = vld [vmem:[%s1675_s3 + $0x320] sm:$0xff] }
 0x11d   :  { %663 = vmatpush.msra.mxu2 %v234_v23  ;;  %605 = vmatpush.msra.mxu0 %v233_v24 }
 0x11e   :  { %634 = vmatpush.msra.mxu1 %v329_v63  ;;  %692 = vmatpush.msra.mxu3 %v330_v33 }
 0x11f   :  { %664 = vmatpush.msra.mxu2 %v228_v34  ;;  %606 = vmatpush.msra.mxu0 %v227_v45 }
 0x120   :  { %635 = vmatpush.msra.mxu1 %v323_v46  ;;  %693 = vmatpush.msra.mxu3 %v324_v30 }
 0x121   :  { %391 = vmatmul.f32.gmra.mxu0 %v1401_v25  ;;  %420 = vmatmul.f32.gmra.mxu1 %v1404_v27 }
 0x122   :  { %449 = vmatmul.f32.gmra.mxu2 %v1401_v25  ;;  %478 = vmatmul.f32.gmra.mxu3 %v1404_v27 }
 0x123   :  { %665 = vmatpush.msra.mxu2 %v222_v26  ;;  %607 = vmatpush.msra.mxu0 %v221_v39 }
 0x124   :  { %636 = vmatpush.msra.mxu1 %v317_v41  ;;  %694 = vmatpush.msra.mxu3 %v318_v42 }
 0x125   :  { %666 = vmatpush.msra.mxu2 %v216_v14  ;;  %608 = vmatpush.msra.mxu0 %v215_v15 }
 0x126   :  { %637 = vmatpush.msra.mxu1 %v311_v49  ;;  %695 = vmatpush.msra.mxu3 %v312_v52 }
 0x127   :  { %667 = vmatpush.msra.mxu2 %v210_v53  ;;  %609 = vmatpush.msra.mxu0 %v209_v8 }
 0x128   :  { %638 = vmatpush.msra.mxu1 %v305_v21  ;;  %696 = vmatpush.msra.mxu3 %v306_v54 }
 0x129   :  { %394 = vmatmul.f32.gmra.mxu0 %v1451_v50  ;;  %423 = vmatmul.f32.gmra.mxu1 %v1454_v51 }
 0x12a   :  { %452 = vmatmul.f32.gmra.mxu2 %v1451_v50  ;;  %481 = vmatmul.f32.gmra.mxu3 %v1454_v51 }
 0x12b   :  { %668 = vmatpush.msra.mxu2 %v204_v4  ;;  %610 = vmatpush.msra.mxu0 %v203_v40 }
 0x12c   :  { %639 = vmatpush.msra.mxu1 %v299_v55  ;;  %697 = vmatpush.msra.mxu3 %v300_v56 }
 0x12d   :  { %669 = vmatpush.msra.mxu2 %v198_v57  ;;  %611 = vmatpush.msra.mxu0 %v197_v58 }
 0x12e   :  { %640 = vmatpush.msra.mxu1 %v293_v59  ;;  %698 = vmatpush.msra.mxu3 %v294_v60 }
 0x12f   :  { %670 = vmatpush.msra.mxu2 %v192_v61  ;;  %612 = vmatpush.msra.mxu0 %v191_v62 }
 0x130   :  { %641 = vmatpush.msra.mxu1 %v287_v0  ;;  %699 = vmatpush.msra.mxu3 %v288_v35 }
 0x131   :  { %501 = vmatmul.f32.vlgmr.msrb.gmra.mxu0 %v1282_v43  ;;  %530 = vmatmul.f32.vlgmr.msrb.gmra.mxu1 %v1285_v44 }
 0x132   :  { %559 = vmatmul.f32.vlgmr.msrb.gmra.mxu2 %v1282_v43  ;;  %588 = vmatmul.f32.vlgmr.msrb.gmra.mxu3 %v1285_v44 }
 0x133   :  { %671 = vmatpush.msra.mxu2 %v186_v47  ;;  %613 = vmatpush.msra.mxu0 %v185_v48 }
 0x134   :  { %642 = vmatpush.msra.mxu1 %v281_v1  ;;  %700 = vmatpush.msra.mxu3 %v282_v2 }
 0x135   :  { %672 = vmatpush.msra.mxu2 %v180_v3  ;;  %614 = vmatpush.msra.mxu0 %v179_v5 }
 0x136   :  { %643 = vmatpush.msra.mxu1 %v275_v6  ;;  %701 = vmatpush.msra.mxu3 %v276_v10 }
 0x137   :  { %673 = vmatpush.msra.mxu2 %v174_v31  ;;  %615 = vmatpush.msra.mxu0 %v173_v32 }
 0x138   :  { %644 = vmatpush.msra.mxu1 %v269_v36  ;;  %702 = vmatpush.msra.mxu3 %v270_v11 }
 0x139   :  { %504 = vmatmul.f32.gmra.mxu0 %v1351_v7  ;;  %533 = vmatmul.f32.gmra.mxu1 %v1354_v9 }
 0x13a   :  { %562 = vmatmul.f32.gmra.mxu2 %v1351_v7  ;;  %591 = vmatmul.f32.gmra.mxu3 %v1354_v9 }
 0x13b   :  { %674 = vmatpush.msra.mxu2 %v168_v12  ;;  %616 = vmatpush.msra.mxu0 %v167_v13 }
 0x13c   :  { %645 = vmatpush.msra.mxu1 %v263_v16  ;;  %703 = vmatpush.msra.mxu3 %v264_v17 }
 0x141   :  { %507 = vmatmul.f32.gmra.mxu0 %v1401_v25  ;;  %536 = vmatmul.f32.gmra.mxu1 %v1404_v27 }
 0x142   :  { %565 = vmatmul.f32.gmra.mxu2 %v1401_v25  ;;  %594 = vmatmul.f32.gmra.mxu3 %v1404_v27 }
 0x149   :  { %510 = vmatmul.f32.gmra.mxu0 %v1451_v50  ;;  %539 = vmatmul.f32.gmra.mxu1 %v1454_v51 }
 0x14a   :  { %568 = vmatmul.f32.gmra.mxu2 %v1451_v50  ;;  %597 = vmatmul.f32.gmra.mxu3 %v1454_v51 }
 0x151   :  { %617 = vmatmul.f32.vlgmr.msra.gmra.mxu0 %v1282_v43  ;;  %646 = vmatmul.f32.vlgmr.msra.gmra.mxu1 %v1285_v44 }
 0x152   :  { %675 = vmatmul.f32.vlgmr.msra.gmra.mxu2 %v1282_v43  ;;  %704 = vmatmul.f32.vlgmr.msra.gmra.mxu3 %v1285_v44  ;;  %v1594_v43 = vld [vmem:[%s1678_s4] sm:$0x3f] }
 0x153   :  { %v357_v44 = vperm.slane %v1594_v43, 0  ;;  %v358_v20 = vperm.slane %v1594_v43, 1  ;;  %v359_v52 = vperm.slane %v1594_v43, 2  ;;  %v360_v57 = vperm.slane %v1594_v43, 3 }
 0x159   :  { %620 = vmatmul.f32.gmra.mxu0 %v1351_v7  ;;  %649 = vmatmul.f32.gmra.mxu1 %v1354_v9 }
 0x15a   :  { %678 = vmatmul.f32.gmra.mxu2 %v1351_v7  ;;  %707 = vmatmul.f32.gmra.mxu3 %v1354_v9 }
 0x161   :  { %623 = vmatmul.f32.gmra.mxu0 %v1401_v25  ;;  %652 = vmatmul.f32.gmra.mxu1 %v1404_v27 }
 0x162   :  { %681 = vmatmul.f32.gmra.mxu2 %v1401_v25  ;;  %710 = vmatmul.f32.gmra.mxu3 %v1404_v27 }
 0x169   :  { %626 = vmatmul.f32.gmra.mxu0 %v1451_v50  ;;  %655 = vmatmul.f32.gmra.mxu1 %v1454_v51 }
 0x16a   :  { %684 = vmatmul.f32.gmra.mxu2 %v1451_v50  ;;  %713 = vmatmul.f32.gmra.mxu3 %v1454_v51 }
 0x18e   :  { %v386_v7 = vpop.f32.mrf.mxu0  ;;  %v415_v9 = vpop.f32.mrf.mxu1 }
 0x18f   :  { %v387_v18 = vadd.f32 %v386_v7, %v357_v44  ;;  %v361_v7 = vperm.slane %v1594_v43, 4 }
 0x191   :  { %v416_v19 = vadd.f32 %v415_v9, %v387_v18 }
 0x193   :  { %717 = vst [vmem:[%s1679_s5] sm:$0xff] %v416_v19 }
 0x195   :  { %v444_v22 = vpop.f32.mrf.mxu2  ;;  %v473_v23 = vpop.f32.mrf.mxu3 }
 0x196   :  { %v445_v24 = vadd.f32 %v444_v22, %v358_v20  ;;  %v389_v63 = vpop.f32.mrf.mxu0  ;;  %v418_v25 = vpop.f32.mrf.mxu1 }
 0x197   :  { %v390_v27 = vadd.f32 %v389_v63, %v357_v44 }
 0x198   :  { %v474_v28 = vadd.f32 %v473_v23, %v445_v24 }
 0x199   :  { %v419_v29 = vadd.f32 %v418_v25, %v390_v27  ;;  %v362_v25 = vperm.slane %v1594_v43, 5 }
 0x19a   :  { %718 = vst [vmem:[%s1679_s5 + $0x8] sm:$0xff] %v474_v28 }
 0x19b   :  { %723 = vst [vmem:[%s1679_s5 + $0x30] sm:$0xff] %v419_v29 }
 0x19d   :  { %v447_v33 = vpop.f32.mrf.mxu2  ;;  %v476_v34 = vpop.f32.mrf.mxu3 }
 0x19e   :  { %v448_v45 = vadd.f32 %v447_v33, %v358_v20  ;;  %v392_v46 = vpop.f32.mrf.mxu0  ;;  %v421_v30 = vpop.f32.mrf.mxu1 }
 0x19f   :  { %v393_v26 = vadd.f32 %v392_v46, %v357_v44 }
 0x1a0   :  { %v477_v37 = vadd.f32 %v476_v34, %v448_v45 }
 0x1a1   :  { %v422_v38 = vadd.f32 %v421_v30, %v393_v26 }
 0x1a2   :  { %724 = vst [vmem:[%s1679_s5 + $0x38] sm:$0xff] %v477_v37 }
 0x1a3   :  { %729 = vst [vmem:[%s1679_s5 + $0x60] sm:$0xff] %v422_v38 }
 0x1a5   :  { %v450_v39 = vpop.f32.mrf.mxu2  ;;  %v479_v41 = vpop.f32.mrf.mxu3 }
 0x1a6   :  { %v451_v42 = vadd.f32 %v450_v39, %v358_v20  ;;  %v395_v14 = vpop.f32.mrf.mxu0  ;;  %v424_v15 = vpop.f32.mrf.mxu1 }
 0x1a7   :  { %v396_v49 = vadd.f32 %v395_v14, %v357_v44 }
 0x1a8   :  { %v480_v50 = vadd.f32 %v479_v41, %v451_v42 }
 0x1a9   :  { %v425_v51 = vadd.f32 %v424_v15, %v396_v49 }
 0x1aa   :  { %730 = vst [vmem:[%s1679_s5 + $0x68] sm:$0xff] %v480_v50 }
 0x1ab   :  { %735 = vst [vmem:[%s1679_s5 + $0x90] sm:$0xff] %v425_v51 }
 0x1ad   :  { %v453_v53 = vpop.f32.mrf.mxu2  ;;  %v482_v8 = vpop.f32.mrf.mxu3 }
 0x1ae   :  { %v454_v21 = vadd.f32 %v453_v53, %v358_v20  ;;  %v502_v54 = vpop.f32.mrf.mxu0  ;;  %v531_v4 = vpop.f32.mrf.mxu1 }
 0x1af   :  { %v503_v40 = vadd.f32 %v502_v54, %v359_v52 }
 0x1b0   :  { %v483_v55 = vadd.f32 %v482_v8, %v454_v21 }
 0x1b1   :  { %v532_v56 = vadd.f32 %v531_v4, %v503_v40 }
 0x1b2   :  { %736 = vst [vmem:[%s1679_s5 + $0x98] sm:$0xff] %v483_v55 }
 0x1b3   :  { %719 = vst [vmem:[%s1679_s5 + $0x10] sm:$0xff] %v532_v56 }
 0x1b5   :  { %v560_v58 = vpop.f32.mrf.mxu2  ;;  %v589_v59 = vpop.f32.mrf.mxu3 }
 0x1b6   :  { %v561_v60 = vadd.f32 %v560_v58, %v360_v57  ;;  %v505_v61 = vpop.f32.mrf.mxu0  ;;  %v534_v62 = vpop.f32.mrf.mxu1 }
 0x1b7   :  { %v506_v0 = vadd.f32 %v505_v61, %v359_v52 }
 0x1b8   :  { %v590_v35 = vadd.f32 %v589_v59, %v561_v60 }
 0x1b9   :  { %v535_v47 = vadd.f32 %v534_v62, %v506_v0 }
 0x1ba   :  { %720 = vst [vmem:[%s1679_s5 + $0x18] sm:$0xff] %v590_v35 }
 0x1bb   :  { %725 = vst [vmem:[%s1679_s5 + $0x40] sm:$0xff] %v535_v47 }
 0x1bd   :  { %v563_v48 = vpop.f32.mrf.mxu2  ;;  %v592_v1 = vpop.f32.mrf.mxu3 }
 0x1be   :  { %v564_v2 = vadd.f32 %v563_v48, %v360_v57  ;;  %v508_v3 = vpop.f32.mrf.mxu0  ;;  %v537_v5 = vpop.f32.mrf.mxu1 }
 0x1bf   :  { %v509_v6 = vadd.f32 %v508_v3, %v359_v52 }
 0x1c0   :  { %v593_v10 = vadd.f32 %v592_v1, %v564_v2 }
 0x1c1   :  { %v538_v31 = vadd.f32 %v537_v5, %v509_v6 }
 0x1c2   :  { %726 = vst [vmem:[%s1679_s5 + $0x48] sm:$0xff] %v593_v10 }
 0x1c3   :  { %731 = vst [vmem:[%s1679_s5 + $0x70] sm:$0xff] %v538_v31 }
 0x1c5   :  { %v566_v32 = vpop.f32.mrf.mxu2  ;;  %v595_v36 = vpop.f32.mrf.mxu3 }
 0x1c6   :  { %v567_v11 = vadd.f32 %v566_v32, %v360_v57  ;;  %v511_v12 = vpop.f32.mrf.mxu0  ;;  %v540_v13 = vpop.f32.mrf.mxu1 }
 0x1c7   :  { %v512_v16 = vadd.f32 %v511_v12, %v359_v52 }
 0x1c8   :  { %v596_v17 = vadd.f32 %v595_v36, %v567_v11 }
 0x1c9   :  { %v541_v44 = vadd.f32 %v540_v13, %v512_v16 }
 0x1ca   :  { %732 = vst [vmem:[%s1679_s5 + $0x78] sm:$0xff] %v596_v17 }
 0x1cb   :  { %737 = vst [vmem:[%s1679_s5 + $0xa0] sm:$0xff] %v541_v44 }
 0x1cd   :  { %v569_v9 = vpop.f32.mrf.mxu2  ;;  %v598_v18 = vpop.f32.mrf.mxu3 }
 0x1ce   :  { %v570_v19 = vadd.f32 %v569_v9, %v360_v57  ;;  %v618_v20 = vpop.f32.mrf.mxu0  ;;  %v647_v22 = vpop.f32.mrf.mxu1 }
 0x1cf   :  { %v619_v23 = vadd.f32 %v618_v20, %v361_v7 }
 0x1d0   :  { %v599_v24 = vadd.f32 %v598_v18, %v570_v19 }
 0x1d1   :  { %v648_v63 = vadd.f32 %v647_v22, %v619_v23 }
 0x1d2   :  { %738 = vst [vmem:[%s1679_s5 + $0xa8] sm:$0xff] %v599_v24 }
 0x1d3   :  { %721 = vst [vmem:[%s1679_s5 + $0x20] sm:$0xff] %v648_v63 }
 0x1d5   :  { %v676_v27 = vpop.f32.mrf.mxu2  ;;  %v705_v28 = vpop.f32.mrf.mxu3 }
 0x1d6   :  { %v677_v29 = vadd.f32 %v676_v27, %v362_v25  ;;  %v621_v33 = vpop.f32.mrf.mxu0  ;;  %v650_v34 = vpop.f32.mrf.mxu1 }
 0x1d7   :  { %v622_v45 = vadd.f32 %v621_v33, %v361_v7 }
 0x1d8   :  { %v706_v46 = vadd.f32 %v705_v28, %v677_v29 }
 0x1d9   :  { %v651_v30 = vadd.f32 %v650_v34, %v622_v45 }
 0x1da   :  { %722 = vst [vmem:[%s1679_s5 + $0x28] sm:$0xff] %v706_v46 }
 0x1db   :  { %727 = vst [vmem:[%s1679_s5 + $0x50] sm:$0xff] %v651_v30 }
 0x1dd   :  { %v679_v43 = vpop.f32.mrf.mxu2  ;;  %v708_v26 = vpop.f32.mrf.mxu3 }
 0x1de   :  { %v680_v37 = vadd.f32 %v679_v43, %v362_v25  ;;  %v624_v38 = vpop.f32.mrf.mxu0  ;;  %v653_v39 = vpop.f32.mrf.mxu1 }
 0x1df   :  { %v625_v41 = vadd.f32 %v624_v38, %v361_v7 }
 0x1e0   :  { %v709_v42 = vadd.f32 %v708_v26, %v680_v37 }
 0x1e1   :  { %v654_v14 = vadd.f32 %v653_v39, %v625_v41 }
 0x1e2   :  { %728 = vst [vmem:[%s1679_s5 + $0x58] sm:$0xff] %v709_v42 }
 0x1e3   :  { %733 = vst [vmem:[%s1679_s5 + $0x80] sm:$0xff] %v654_v14 }
 0x1e5   :  { %v682_v15 = vpop.f32.mrf.mxu2  ;;  %v711_v49 = vpop.f32.mrf.mxu3 }
 0x1e6   :  { %v683_v50 = vadd.f32 %v682_v15, %v362_v25  ;;  %v627_v51 = vpop.f32.mrf.mxu0  ;;  %v656_v8 = vpop.f32.mrf.mxu1 }
 0x1e7   :  { %v628_v52 = vadd.f32 %v627_v51, %v361_v7 }
 0x1e8   :  { %v712_v53 = vadd.f32 %v711_v49, %v683_v50 }
 0x1e9   :  { %v657_v21 = vadd.f32 %v656_v8, %v628_v52 }
 0x1ea   :  { %734 = vst [vmem:[%s1679_s5 + $0x88] sm:$0xff] %v712_v53 }
 0x1eb   :  { %739 = vst [vmem:[%s1679_s5 + $0xb0] sm:$0xff] %v657_v21 }
 0x1ed   :  { %v685_v54 = vpop.f32.mrf.mxu2  ;;  %v714_v40 = vpop.f32.mrf.mxu3 }
 0x1ee   :  { %v686_v4 = vadd.f32 %v685_v54, %v362_v25 }
 0x1f0   :  { %v715_v55 = vadd.f32 %v714_v40, %v686_v4 }
 0x1f2   :  { %740 = vst [vmem:[%s1679_s5 + $0xb8] sm:$0xff] %v715_v55 }

</bundles_post_ra>
